<compile_context>
chip_gen: v5e
topology: v5e:2x2
jax: 0.10.0
libtpu: 0.0.40
codegen_flags: <defaults>
</compile_context>

<pallas_src>
import jax
import jax.numpy as jnp
from jax.experimental import pallas as pl
from jax.experimental.pallas import tpu as pltpu

# ---------------- model hyper-parameters ------------------------------------
IN_CH = 4           # input_channels_node
HID = 128           # hidden_channels (module default)
HID2 = HID // 2     # 64
OUT_CH = 1          # output_channels
OUT_PAD = 128       # lane-dense padded output width (sliced to OUT_CH outside)
NUM_LAYERS = 3      # num_layers

NUM_GRAPHS = 4
NUM_NODES = 32
NUM_EDGES = 64


# ---------------------------- Pallas kernel ---------------------------------
def gcnnet_kernel(x_ref, src_ref, dst_ref,
                  w0_ref, b0_ref, w1_ref, b1_ref,        # node_lin: Lin, ReLU, Lin
                  wg_ref, bg_ref,                        # stacked GCNConv weights / biases
                  wl1_ref, bl1_ref, wl2_ref, bl2_ref,    # head lin1, lin2
                  out_ref):
    f32, bf16 = jnp.float32, jnp.bfloat16
    gn = out_ref.shape[0]       # total nodes (G * N)
    ge = src_ref.shape[0]       # total edges (G * E)

    # ---- fused adjacency build + gcn_norm -----------------------------------
    # A[dst, src] += 1 done as a one-hot x one-hot matmul on the MXU.
    # onehot_dst_T[d, e] = (d == dst[e]) ; onehot_src[e, s] = (src[e] == s)
    row_iota = jax.lax.broadcasted_iota(jnp.int32, (gn, ge), 0)
    col_iota = jax.lax.broadcasted_iota(jnp.int32, (ge, gn), 1)
    oh_dst_t = (row_iota == dst_ref[...]).astype(bf16)     # dst_ref: (1, GE)
    oh_src = (col_iota == src_ref[...]).astype(bf16)       # src_ref: (GE, 1)
    adj = jnp.dot(oh_dst_t, oh_src, preferred_element_type=f32)   # (GN, GN) counts
    # in-degree + self-loop; D^-1/2 kept in f32 end-to-end
    deg = jnp.sum(adj, axis=1, keepdims=True) + 1.0
    dinv = jax.lax.rsqrt(deg)                               # (GN, 1) f32
    adj_bf = adj.astype(bf16)                               # small ints -> exact in bf16

    # ---- node_lin: Linear -> ReLU -> Linear ---------------------------------
    h = jnp.dot(x_ref[...].astype(bf16), w0_ref[...],
                preferred_element_type=f32) + b0_ref[...]
    h = jnp.maximum(h, 0.0)
    h = jnp.dot(h.astype(bf16), w1_ref[...],
                preferred_element_type=f32) + b1_ref[...]

    # ---- GCNConv blocks: h = relu(D^-1/2 (A+I) D^-1/2 (h W) + b) ------------
    # = relu(dinv * (A @ (dinv * hW) + (dinv * hW)) + b)   (no eye, no transpose)
    for l in range(NUM_LAYERS):
        hw = jnp.dot(h.astype(bf16), wg_ref[l], preferred_element_type=f32)
        y = dinv * hw                                       # f32 row scaling
        agg = jnp.dot(adj_bf, y.astype(bf16), preferred_element_type=f32) + y
        h = jnp.maximum(dinv * agg + bg_ref[l], 0.0)

    # ---- head: lin1 -> relu -> lin2 (lane-dense padded output) --------------
    h = jnp.dot(h.astype(bf16), wl1_ref[...],
                preferred_element_type=f32) + bl1_ref[...]
    h = jnp.maximum(h, 0.0)
    out_ref[...] = jnp.dot(h.astype(bf16), wl2_ref[...],
                           preferred_element_type=f32) + bl2_ref[...]


# ------------------------------ params ---------------------------------------
def init_params(key):
    """Deterministic init. Weights stored as (in, out), pre-cast to bf16 ONCE
    (outside any jitted forward); biases stay f32. wl2 is zero-padded to 128
    output lanes (padding is zeros -> semantics unchanged after slicing)."""
    ks = jax.random.split(key, 8)

    def xavier(k, fan_in, fan_out):
        bound = (6.0 / (fan_in + fan_out)) ** 0.5
        return jax.random.uniform(k, (fan_in, fan_out), jnp.float32, -bound, bound)

    wl2 = jnp.zeros((HID2, OUT_PAD), jnp.float32).at[:, :OUT_CH].set(
        xavier(ks[6], HID2, OUT_CH))
    bf = lambda w: w.astype(jnp.bfloat16)

    return {
        "w0": bf(xavier(ks[0], IN_CH, HID)),
        "b0": jnp.zeros((1, HID), jnp.float32),
        "w1": bf(xavier(ks[1], HID, HID)),
        "b1": jnp.zeros((1, HID), jnp.float32),
        "wg": bf(jnp.stack([xavier(ks[2 + l], HID, HID) for l in range(NUM_LAYERS)])),
        "bg": jnp.zeros((NUM_LAYERS, 1, HID), jnp.float32),
        "wl1": bf(xavier(ks[5], HID, HID2)),
        "bl1": jnp.zeros((1, HID2), jnp.float32),
        "wl2": bf(wl2),
        "bl2": jnp.zeros((1, OUT_PAD), jnp.float32),
    }


# ------------------------------ forward ---------------------------------------
@jax.jit
def gcnnet_forward(params, x, pos, edge_index, batch):
    # pos and batch are unused by GCNNet.forward (no readout in forward).
    del pos, batch
    g, n, _ = x.shape
    e = edge_index.shape[-1]
    gn, ge = g * n, g * e

    # flatten graphs into one node batch (M = G*N rows for every matmul)
    x_flat = x.reshape(gn, IN_CH)

    # shift edge ids to global node ids; the block-diagonal structure then
    # falls out of the in-kernel one-hot matmul for free.
    offs = (jnp.arange(g, dtype=jnp.int32) * n)[:, None]            # (G, 1)
    src_g = (edge_index[:, 0, :].astype(jnp.int32) + offs).reshape(ge, 1)
    dst_g = (edge_index[:, 1, :].astype(jnp.int32) + offs).reshape(1, ge)

    args = (x_flat, src_g, dst_g,
            params["w0"], params["b0"], params["w1"], params["b1"],
            params["wg"], params["bg"],
            params["wl1"], params["bl1"], params["wl2"], params["bl2"])

    # advisory cost estimate (2*M*K*N per matmul + adjacency matmul)
    flops = (2 * gn * ge * gn                                        # adjacency build
             + 2 * gn * (IN_CH * HID + HID * HID
                         + NUM_LAYERS * (HID * HID + gn * HID)
                         + HID * HID2 + HID2 * OUT_PAD))
    bytes_accessed = int(sum(a.size * a.dtype.itemsize for a in args)) \
        + gn * OUT_PAD * 4

    vmem_spec = pl.BlockSpec(memory_space=pltpu.MemorySpace.VMEM)
    out_pad = pl.pallas_call(
        gcnnet_kernel,
        out_shape=jax.ShapeDtypeStruct((gn, OUT_PAD), jnp.float32),
        in_specs=[vmem_spec] * len(args),
        out_specs=vmem_spec,
        cost_estimate=pl.CostEstimate(
            flops=int(flops),
            transcendentals=int(gn),          # one rsqrt per node
            bytes_accessed=bytes_accessed),
    )(*args)

    # strip lane padding of the final projection and restore (G, N, OUT_CH)
    return out_pad[:, :OUT_CH].reshape(g, n, OUT_CH)


# ---------------------------------- main --------------------------------------
if __name__ == "__main__":
    key = jax.random.PRNGKey(0)
    k_param, k_x, k_pos, k_src, k_dst = jax.random.split(key, 5)

    params = init_params(k_param)

    x = jax.random.normal(k_x, (NUM_GRAPHS, NUM_NODES, IN_CH), jnp.float32)
    pos = jax.random.normal(k_pos, (NUM_GRAPHS, NUM_NODES, 3), jnp.float32)
    # random edges with no self-loops, so "A + I" matches PyG's
    # add_remaining_self_loops exactly; duplicate edges accumulate in both.
    src = jax.random.randint(k_src, (NUM_GRAPHS, NUM_EDGES), 0, NUM_NODES, jnp.int32)
    delta = jax.random.randint(k_dst, (NUM_GRAPHS, NUM_EDGES), 1, NUM_NODES, jnp.int32)
    dst = (src + delta) % NUM_NODES
    edge_index = jnp.stack([src, dst], axis=1)                       # (G, 2, E)
    batch = jnp.repeat(jnp.arange(NUM_GRAPHS, dtype=jnp.int32)[:, None],
                       NUM_NODES, axis=1)                            # (G, N)

    out = gcnnet_forward(params, x, pos, edge_index, batch)
    jax.block_until_ready(out)
    assert out.shape == (NUM_GRAPHS, NUM_NODES, OUT_CH)
    print("KERNEL_OK")
</pallas_src>

<mosaic_0001>
module attributes {stable_mosaic.version = 11 : i64} {
  func.func @gcnnet_kernel(%arg0: memref<128x4xf32, #tpu.memory_space<vmem>>, %arg1: memref<256x1xi32, #tpu.memory_space<vmem>>, %arg2: memref<1x256xi32, #tpu.memory_space<vmem>>, %arg3: memref<4x128xbf16, #tpu.memory_space<vmem>>, %arg4: memref<1x128xf32, #tpu.memory_space<vmem>>, %arg5: memref<128x128xbf16, #tpu.memory_space<vmem>>, %arg6: memref<1x128xf32, #tpu.memory_space<vmem>>, %arg7: memref<3x128x128xbf16, #tpu.memory_space<vmem>>, %arg8: memref<3x1x128xf32, #tpu.memory_space<vmem>>, %arg9: memref<128x64xbf16, #tpu.memory_space<vmem>>, %arg10: memref<1x64xf32, #tpu.memory_space<vmem>>, %arg11: memref<64x128xbf16, #tpu.memory_space<vmem>>, %arg12: memref<1x128xf32, #tpu.memory_space<vmem>>, %arg13: memref<128x128xf32, #tpu.memory_space<vmem>>) attributes {dimension_semantics = [], scalar_prefetch = 0 : i64, scratch_operands = 0 : i64, tpu.core_type = #tpu.core_type<tc>} {
    %0 = tpu.iota {dimensions = array<i32: 0>} : vector<128x256xi32>
    %1 = tpu.iota {dimensions = array<i32: 1>} : vector<256x128xi32>
    %c0 = arith.constant 0 : index
    %c0_0 = arith.constant 0 : index
    %2 = vector.load %arg2[%c0, %c0_0] : memref<1x256xi32, #tpu.memory_space<vmem>>, vector<1x256xi32>
    %3 = vector.broadcast %2 : vector<1x256xi32> to vector<128x256xi32>
    %4 = arith.cmpi eq, %0, %3 : vector<128x256xi32>
    %5 = arith.extui %4 : vector<128x256xi1> to vector<128x256xi32>
    %6 = arith.sitofp %5 : vector<128x256xi32> to vector<128x256xf32>
    %7 = arith.truncf %6 : vector<128x256xf32> to vector<128x256xbf16>
    %c0_1 = arith.constant 0 : index
    %c0_2 = arith.constant 0 : index
    %8 = vector.load %arg1[%c0_1, %c0_2] : memref<256x1xi32, #tpu.memory_space<vmem>>, vector<256x1xi32>
    %9 = vector.broadcast %8 : vector<256x1xi32> to vector<256x128xi32>
    %10 = arith.cmpi eq, %1, %9 : vector<256x128xi32>
    %11 = arith.extui %10 : vector<256x128xi1> to vector<256x128xi32>
    %12 = arith.sitofp %11 : vector<256x128xi32> to vector<256x128xf32>
    %13 = arith.truncf %12 : vector<256x128xf32> to vector<256x128xbf16>
    %cst = arith.constant dense<0.000000e+00> : vector<128x128xf32>
    %14 = tpu.matmul %7, %13, %cst {dimension_numbers = #tpu.dot_dimension_numbers<[1], [0], [0], [1], [0, 0, 1, 1], [], []>} : vector<128x256xbf16>, vector<256x128xbf16>, vector<128x128xf32> -> vector<128x128xf32>
    %cst_3 = arith.constant dense<0.000000e+00> : vector<128xf32>
    %15 = vector.multi_reduction <add>, %14, %cst_3 [1] : vector<128x128xf32> to vector<128xf32>
    %16 = vector.shape_cast %15 : vector<128xf32> to vector<128x1xf32>
    %cst_4 = arith.constant 1.000000e+00 : f32
    %17 = vector.broadcast %cst_4 : f32 to vector<128x1xf32>
    %18 = arith.addf %16, %17 : vector<128x1xf32>
    %19 = math.rsqrt %18 : vector<128x1xf32>
    %20 = arith.truncf %14 : vector<128x128xf32> to vector<128x128xbf16>
    %c0_5 = arith.constant 0 : index
    %c0_6 = arith.constant 0 : index
    %21 = vector.load %arg0[%c0_5, %c0_6] : memref<128x4xf32, #tpu.memory_space<vmem>>, vector<128x4xf32>
    %22 = arith.truncf %21 : vector<128x4xf32> to vector<128x4xbf16>
    %c0_7 = arith.constant 0 : index
    %c0_8 = arith.constant 0 : index
    %23 = vector.load %arg3[%c0_7, %c0_8] : memref<4x128xbf16, #tpu.memory_space<vmem>>, vector<4x128xbf16>
    %cst_9 = arith.constant dense<0.000000e+00> : vector<128x128xf32>
    %24 = tpu.matmul %22, %23, %cst_9 {dimension_numbers = #tpu.dot_dimension_numbers<[1], [0], [0], [1], [0, 0, 1, 1], [], []>} : vector<128x4xbf16>, vector<4x128xbf16>, vector<128x128xf32> -> vector<128x128xf32>
    %c0_10 = arith.constant 0 : index
    %c0_11 = arith.constant 0 : index
    %25 = vector.load %arg4[%c0_10, %c0_11] : memref<1x128xf32, #tpu.memory_space<vmem>>, vector<1x128xf32>
    %26 = vector.broadcast %25 : vector<1x128xf32> to vector<128x128xf32>
    %27 = arith.addf %24, %26 : vector<128x128xf32>
    %cst_12 = arith.constant 0.000000e+00 : f32
    %28 = vector.broadcast %cst_12 : f32 to vector<128x128xf32>
    %29 = arith.maximumf %27, %28 : vector<128x128xf32>
    %30 = arith.truncf %29 : vector<128x128xf32> to vector<128x128xbf16>
    %c0_13 = arith.constant 0 : index
    %c0_14 = arith.constant 0 : index
    %31 = vector.load %arg5[%c0_13, %c0_14] : memref<128x128xbf16, #tpu.memory_space<vmem>>, vector<128x128xbf16>
    %cst_15 = arith.constant dense<0.000000e+00> : vector<128x128xf32>
    %32 = tpu.matmul %30, %31, %cst_15 {dimension_numbers = #tpu.dot_dimension_numbers<[1], [0], [0], [1], [0, 0, 1, 1], [], []>} : vector<128x128xbf16>, vector<128x128xbf16>, vector<128x128xf32> -> vector<128x128xf32>
    %c0_16 = arith.constant 0 : index
    %c0_17 = arith.constant 0 : index
    %33 = vector.load %arg6[%c0_16, %c0_17] : memref<1x128xf32, #tpu.memory_space<vmem>>, vector<1x128xf32>
    %34 = vector.broadcast %33 : vector<1x128xf32> to vector<128x128xf32>
    %35 = arith.addf %32, %34 : vector<128x128xf32>
    %36 = arith.truncf %35 : vector<128x128xf32> to vector<128x128xbf16>
    %c0_18 = arith.constant 0 : index
    %c0_19 = arith.constant 0 : index
    %c0_20 = arith.constant 0 : index
    %37 = vector.load %arg7[%c0_18, %c0_19, %c0_20] : memref<3x128x128xbf16, #tpu.memory_space<vmem>>, vector<1x128x128xbf16>
    %38 = vector.shape_cast %37 : vector<1x128x128xbf16> to vector<128x128xbf16>
    %cst_21 = arith.constant dense<0.000000e+00> : vector<128x128xf32>
    %39 = tpu.matmul %36, %38, %cst_21 {dimension_numbers = #tpu.dot_dimension_numbers<[1], [0], [0], [1], [0, 0, 1, 1], [], []>} : vector<128x128xbf16>, vector<128x128xbf16>, vector<128x128xf32> -> vector<128x128xf32>
    %40 = vector.broadcast %19 : vector<128x1xf32> to vector<128x128xf32>
    %41 = arith.mulf %40, %39 : vector<128x128xf32>
    %42 = arith.truncf %41 : vector<128x128xf32> to vector<128x128xbf16>
    %cst_22 = arith.constant dense<0.000000e+00> : vector<128x128xf32>
    %43 = tpu.matmul %20, %42, %cst_22 {dimension_numbers = #tpu.dot_dimension_numbers<[1], [0], [0], [1], [0, 0, 1, 1], [], []>} : vector<128x128xbf16>, vector<128x128xbf16>, vector<128x128xf32> -> vector<128x128xf32>
    %44 = arith.addf %43, %41 : vector<128x128xf32>
    %45 = vector.broadcast %19 : vector<128x1xf32> to vector<128x128xf32>
    %46 = arith.mulf %45, %44 : vector<128x128xf32>
    %c0_23 = arith.constant 0 : index
    %c0_24 = arith.constant 0 : index
    %c0_25 = arith.constant 0 : index
    %47 = vector.load %arg8[%c0_23, %c0_24, %c0_25] : memref<3x1x128xf32, #tpu.memory_space<vmem>>, vector<1x1x128xf32>
    %48 = vector.shape_cast %47 : vector<1x1x128xf32> to vector<1x128xf32>
    %49 = vector.broadcast %48 : vector<1x128xf32> to vector<128x128xf32>
    %50 = arith.addf %46, %49 : vector<128x128xf32>
    %cst_26 = arith.constant 0.000000e+00 : f32
    %51 = vector.broadcast %cst_26 : f32 to vector<128x128xf32>
    %52 = arith.maximumf %50, %51 : vector<128x128xf32>
    %53 = arith.truncf %52 : vector<128x128xf32> to vector<128x128xbf16>
    %c1 = arith.constant 1 : index
    %c0_27 = arith.constant 0 : index
    %c0_28 = arith.constant 0 : index
    %54 = vector.load %arg7[%c1, %c0_27, %c0_28] : memref<3x128x128xbf16, #tpu.memory_space<vmem>>, vector<1x128x128xbf16>
    %55 = vector.shape_cast %54 : vector<1x128x128xbf16> to vector<128x128xbf16>
    %cst_29 = arith.constant dense<0.000000e+00> : vector<128x128xf32>
    %56 = tpu.matmul %53, %55, %cst_29 {dimension_numbers = #tpu.dot_dimension_numbers<[1], [0], [0], [1], [0, 0, 1, 1], [], []>} : vector<128x128xbf16>, vector<128x128xbf16>, vector<128x128xf32> -> vector<128x128xf32>
    %57 = vector.broadcast %19 : vector<128x1xf32> to vector<128x128xf32>
    %58 = arith.mulf %57, %56 : vector<128x128xf32>
    %59 = arith.truncf %58 : vector<128x128xf32> to vector<128x128xbf16>
    %cst_30 = arith.constant dense<0.000000e+00> : vector<128x128xf32>
    %60 = tpu.matmul %20, %59, %cst_30 {dimension_numbers = #tpu.dot_dimension_numbers<[1], [0], [0], [1], [0, 0, 1, 1], [], []>} : vector<128x128xbf16>, vector<128x128xbf16>, vector<128x128xf32> -> vector<128x128xf32>
    %61 = arith.addf %60, %58 : vector<128x128xf32>
    %62 = vector.broadcast %19 : vector<128x1xf32> to vector<128x128xf32>
    %63 = arith.mulf %62, %61 : vector<128x128xf32>
    %c1_31 = arith.constant 1 : index
    %c0_32 = arith.constant 0 : index
    %c0_33 = arith.constant 0 : index
    %64 = vector.load %arg8[%c1_31, %c0_32, %c0_33] : memref<3x1x128xf32, #tpu.memory_space<vmem>>, vector<1x1x128xf32>
    %65 = vector.shape_cast %64 : vector<1x1x128xf32> to vector<1x128xf32>
    %66 = vector.broadcast %65 : vector<1x128xf32> to vector<128x128xf32>
    %67 = arith.addf %63, %66 : vector<128x128xf32>
    %cst_34 = arith.constant 0.000000e+00 : f32
    %68 = vector.broadcast %cst_34 : f32 to vector<128x128xf32>
    %69 = arith.maximumf %67, %68 : vector<128x128xf32>
    %70 = arith.truncf %69 : vector<128x128xf32> to vector<128x128xbf16>
    %c2 = arith.constant 2 : index
    %c0_35 = arith.constant 0 : index
    %c0_36 = arith.constant 0 : index
    %71 = vector.load %arg7[%c2, %c0_35, %c0_36] : memref<3x128x128xbf16, #tpu.memory_space<vmem>>, vector<1x128x128xbf16>
    %72 = vector.shape_cast %71 : vector<1x128x128xbf16> to vector<128x128xbf16>
    %cst_37 = arith.constant dense<0.000000e+00> : vector<128x128xf32>
    %73 = tpu.matmul %70, %72, %cst_37 {dimension_numbers = #tpu.dot_dimension_numbers<[1], [0], [0], [1], [0, 0, 1, 1], [], []>} : vector<128x128xbf16>, vector<128x128xbf16>, vector<128x128xf32> -> vector<128x128xf32>
    %74 = vector.broadcast %19 : vector<128x1xf32> to vector<128x128xf32>
    %75 = arith.mulf %74, %73 : vector<128x128xf32>
    %76 = arith.truncf %75 : vector<128x128xf32> to vector<128x128xbf16>
    %cst_38 = arith.constant dense<0.000000e+00> : vector<128x128xf32>
    %77 = tpu.matmul %20, %76, %cst_38 {dimension_numbers = #tpu.dot_dimension_numbers<[1], [0], [0], [1], [0, 0, 1, 1], [], []>} : vector<128x128xbf16>, vector<128x128xbf16>, vector<128x128xf32> -> vector<128x128xf32>
    %78 = arith.addf %77, %75 : vector<128x128xf32>
    %79 = vector.broadcast %19 : vector<128x1xf32> to vector<128x128xf32>
    %80 = arith.mulf %79, %78 : vector<128x128xf32>
    %c2_39 = arith.constant 2 : index
    %c0_40 = arith.constant 0 : index
    %c0_41 = arith.constant 0 : index
    %81 = vector.load %arg8[%c2_39, %c0_40, %c0_41] : memref<3x1x128xf32, #tpu.memory_space<vmem>>, vector<1x1x128xf32>
    %82 = vector.shape_cast %81 : vector<1x1x128xf32> to vector<1x128xf32>
    %83 = vector.broadcast %82 : vector<1x128xf32> to vector<128x128xf32>
    %84 = arith.addf %80, %83 : vector<128x128xf32>
    %cst_42 = arith.constant 0.000000e+00 : f32
    %85 = vector.broadcast %cst_42 : f32 to vector<128x128xf32>
    %86 = arith.maximumf %84, %85 : vector<128x128xf32>
    %87 = arith.truncf %86 : vector<128x128xf32> to vector<128x128xbf16>
    %c0_43 = arith.constant 0 : index
    %c0_44 = arith.constant 0 : index
    %88 = vector.load %arg9[%c0_43, %c0_44] : memref<128x64xbf16, #tpu.memory_space<vmem>>, vector<128x64xbf16>
    %cst_45 = arith.constant dense<0.000000e+00> : vector<128x64xf32>
    %89 = tpu.matmul %87, %88, %cst_45 {dimension_numbers = #tpu.dot_dimension_numbers<[1], [0], [0], [1], [0, 0, 1, 1], [], []>} : vector<128x128xbf16>, vector<128x64xbf16>, vector<128x64xf32> -> vector<128x64xf32>
    %c0_46 = arith.constant 0 : index
    %c0_47 = arith.constant 0 : index
    %90 = vector.load %arg10[%c0_46, %c0_47] : memref<1x64xf32, #tpu.memory_space<vmem>>, vector<1x64xf32>
    %91 = vector.broadcast %90 : vector<1x64xf32> to vector<128x64xf32>
    %92 = arith.addf %89, %91 : vector<128x64xf32>
    %cst_48 = arith.constant 0.000000e+00 : f32
    %93 = vector.broadcast %cst_48 : f32 to vector<128x64xf32>
    %94 = arith.maximumf %92, %93 : vector<128x64xf32>
    %95 = arith.truncf %94 : vector<128x64xf32> to vector<128x64xbf16>
    %c0_49 = arith.constant 0 : index
    %c0_50 = arith.constant 0 : index
    %96 = vector.load %arg11[%c0_49, %c0_50] : memref<64x128xbf16, #tpu.memory_space<vmem>>, vector<64x128xbf16>
    %cst_51 = arith.constant dense<0.000000e+00> : vector<128x128xf32>
    %97 = tpu.matmul %95, %96, %cst_51 {dimension_numbers = #tpu.dot_dimension_numbers<[1], [0], [0], [1], [0, 0, 1, 1], [], []>} : vector<128x64xbf16>, vector<64x128xbf16>, vector<128x128xf32> -> vector<128x128xf32>
    %c0_52 = arith.constant 0 : index
    %c0_53 = arith.constant 0 : index
    %98 = vector.load %arg12[%c0_52, %c0_53] : memref<1x128xf32, #tpu.memory_space<vmem>>, vector<1x128xf32>
    %99 = vector.broadcast %98 : vector<1x128xf32> to vector<128x128xf32>
    %100 = arith.addf %97, %99 : vector<128x128xf32>
    %c0_54 = arith.constant 0 : index
    %c0_55 = arith.constant 0 : index
    %101 = vector.load %arg13[%c0_54, %c0_55] : memref<128x128xf32, #tpu.memory_space<vmem>>, vector<128x128xf32>
    tpu.vector_store %arg13[%c0_54, %c0_55], %100 {strides = array<i32>} : memref<128x128xf32, #tpu.memory_space<vmem>>, vector<128x128xf32>,
    return
  }
}

</mosaic_0001>

<bundles_post_ra>
// kernel: gcnnet_forward.1
= control target key start
LH: loop header
LB: loop body
LE: loop exit
PB: predicated region body
PF: predicated region fallthrough
CT: control target
= control target key end

     0   :  { %v2444_v0 = vmov 0   ;;  %vm787_vm0 = vcmask 1041408   ;;  %vm762_vm1 = vcmask 31744   ;;  %s3679_s1 = inlined_call_operand.vmem [shape: s32[256,1], index: 1, kind: input, shape index: {}]   ;;  %s3680_s3 = inlined_call_operand.vmem [shape: bf16[4,128], index: 3, kind: input, shape index: {}]   ;;  %s3681_s0 = inlined_call_operand.vmem [shape: f32[128,4], index: 0, kind: input, shape index: {}]   ;;  %s3682_s4 = inlined_call_operand.vmem [shape: f32[1,128], index: 4, kind: input, shape index: {}]   ;;  %s3683_s5 = inlined_call_operand.vmem [shape: bf16[128,128], index: 5, kind: input, shape index: {}]   ;;  %s3684_s6 = inlined_call_operand.vmem [shape: f32[1,128], index: 6, kind: input, shape index: {}]   ;;  %s3685_s2 = inlined_call_operand.vmem [shape: s32[1,256], index: 2, kind: input, shape index: {}]   ;;  %s3686_s7 = inlined_call_operand.vmem [shape: bf16[3,128,128], index: 7, kind: input, shape index: {}]   ;;  %s3687_s8 = inlined_call_operand.vmem [shape: f32[3,1,128], index: 8, kind: input, shape index: {}]   ;;  %s3688_s9 = inlined_call_operand.vmem [shape: bf16[128,64], index: 9, kind: input, shape index: {}]   ;;  %s3689_s10 = inlined_call_operand.vmem [shape: f32[1,64], index: 10, kind: input, shape index: {}]   ;;  %s3690_s11 = inlined_call_operand.vmem [shape: bf16[64,128], index: 11, kind: input, shape index: {}]   ;;  %s3691_s12 = inlined_call_operand.vmem [shape: f32[1,128], index: 12, kind: input, shape index: {}]   ;;  %s3692_s13 = inlined_call_operand.vmem [shape: f32[128,128], index: 13, kind: output, shape index: {}]  }
   0x1   :  { %2404 = vset.pattern.permute.xlu2 %v2444_v0  ;;  %2403 = vset.pattern.permute.xlu1 %v2444_v0  ;;  %v209_v1 = vld [vmem:[%s3679_s1 + $0xf0] sm:$0xff]  ;;  %v191_v3 = vld [vmem:[%s3679_s1 + $0x60] sm:$0xff]  ;;  %v734_v6 = vld [vmem:[%s3681_s0 + $0x8] sm:$0xff] }
   0x2   :  { %v193_v2 = vld [vmem:[%s3679_s1 + $0x70] sm:$0xff]  ;;  %2402 = vset.pattern.permute.xlu0 %v2444_v0  ;;  %302 = vperm.xlu1 %2403, %v209_v1   ;;  %v757_v4 = vld [vmem:[%s3680_s3] sm:$0x3]  ;;  %v210_v9 = vld [vmem:[%s3679_s1 + $0xf8] sm:$0xff]  ;;  %v45_v1 = vlaneseq }
   0x3   :  { %254 = vperm.xlu0 %2402, %v193_v2   ;;  %248 = vperm.xlu2 %2404, %v191_v3   ;;  %v733_v5 = vld [vmem:[%s3681_s0] sm:$0xff]  ;;  %v789_v7 = vsel %vm787_vm0, %v757_v4, 0  ;;  %v194_v10 = vld [vmem:[%s3679_s1 + $0x78] sm:$0xff]  ;;  %v192_v11 = vld [vmem:[%s3679_s1 + $0x68] sm:$0xff] }
   0x4   :  { %v749_v8 = vpack.c.bf16 %v734_v6, %v733_v5  ;;  %798 = vmatpush.bf16.msra.mxu2 %v789_v7  ;;  %v208_v12 = vld [vmem:[%s3679_s1 + $0xe8] sm:$0xff]  ;;  %v207_v13 = vld [vmem:[%s3679_s1 + $0xe0] sm:$0xff]  ;;  %v189_v14 = vld [vmem:[%s3679_s1 + $0x50] sm:$0xff]  ;;  %v2686_v6 = vand.u32 127, %v45_v1 }
   0x5   :  { %v735_v15 = vld [vmem:[%s3681_s0 + $0x10] sm:$0xff]  ;;  %v736_v16 = vld [vmem:[%s3681_s0 + $0x18] sm:$0xff]  ;;  %v188_v21 = vld [vmem:[%s3679_s1 + $0x48] sm:$0xff] }
   0x6   :  { %v750_v17 = vpack.c.bf16 %v736_v16, %v735_v15  ;;  %v205_v18 = vld [vmem:[%s3679_s1 + $0xd0] sm:$0xff]  ;;  %v190_v19 = vld [vmem:[%s3679_s1 + $0x58] sm:$0xff]  ;;  %v203_v22 = vld [vmem:[%s3679_s1 + $0xc0] sm:$0xff] }
   0x7   :  { %2130 = vmatmul.msk.bf16.vlgmr.msra.gmra.mxu2 %vm762_vm1, %v749_v8  ;;  %v206_v20 = vld [vmem:[%s3679_s1 + $0xd8] sm:$0xff]  ;;  %v187_v23 = vld [vmem:[%s3679_s1 + $0x40] sm:$0xff]  ;;  %v738_v25 = vld [vmem:[%s3681_s0 + $0x28] sm:$0xff] }
   0x8   :  { %v737_v24 = vld [vmem:[%s3681_s0 + $0x20] sm:$0xff]  ;;  %v185_v27 = vld [vmem:[%s3679_s1 + $0x30] sm:$0xff]  ;;  %v204_v28 = vld [vmem:[%s3679_s1 + $0xc8] sm:$0xff] }
   0x9   :  { %v751_v26 = vpack.c.bf16 %v738_v25, %v737_v24  ;;  %v186_v29 = vld [vmem:[%s3679_s1 + $0x38] sm:$0xff]  ;;  %v201_v31 = vld [vmem:[%s3679_s1 + $0xb0] sm:$0xff]  ;;  %v183_v32 = vld [vmem:[%s3679_s1 + $0x20] sm:$0xff] }
   0xa   :  { %305 = vperm.xlu1 %2403, %v210_v9   ;;  %v202_v30 = vld [vmem:[%s3679_s1 + $0xb8] sm:$0xff]  ;;  %v739_v33 = vld [vmem:[%s3681_s0 + $0x30] sm:$0xff]  ;;  %v199_v36 = vld [vmem:[%s3679_s1 + $0xa0] sm:$0xff] }
   0xb   :  { %257 = vperm.xlu0 %2402, %v194_v10   ;;  %251 = vperm.xlu2 %2404, %v192_v11   ;;  %v740_v34 = vld [vmem:[%s3681_s0 + $0x38] sm:$0xff]  ;;  %v184_v37 = vld [vmem:[%s3679_s1 + $0x28] sm:$0xff]  ;;  %v197_v40 = vld [vmem:[%s3679_s1 + $0x90] sm:$0xff]  ;;  %v2445_v11 = vmov 1.0|1.0  }
   0xc   :  { %v752_v35 = vpack.c.bf16 %v740_v34, %v739_v33  ;;  %v200_v38 = vld [vmem:[%s3679_s1 + $0xa8] sm:$0xff]  ;;  %v182_v39 = vld [vmem:[%s3679_s1 + $0x18] sm:$0xff]  ;;  %v181_v41 = vld [vmem:[%s3679_s1 + $0x10] sm:$0xff] }
   0xd   :  { %v741_v42 = vld [vmem:[%s3681_s0 + $0x40] sm:$0xff]  ;;  %v742_v43 = vld [vmem:[%s3681_s0 + $0x48] sm:$0xff]  ;;  %v198_v46 = vld [vmem:[%s3679_s1 + $0x98] sm:$0xff] }
   0xe   :  { %v753_v44 = vpack.c.bf16 %v742_v43, %v741_v42  ;;  %v179_v45 = vld [vmem:[%s3679_s1] sm:$0xff]  ;;  %v180_v47 = vld [vmem:[%s3679_s1 + $0x8] sm:$0xff]  ;;  %v743_v50 = vld [vmem:[%s3681_s0 + $0x50] sm:$0xff] }
   0xf   :  { %v196_v48 = vld [vmem:[%s3679_s1 + $0x88] sm:$0xff]  ;;  %v195_v49 = vld [vmem:[%s3679_s1 + $0x80] sm:$0xff]  ;;  %v744_v51 = vld [vmem:[%s3681_s0 + $0x58] sm:$0xff] }
  0x10   :  { %v754_v52 = vpack.c.bf16 %v744_v51, %v743_v50  ;;  %v745_v54 = vld [vmem:[%s3681_s0 + $0x60] sm:$0xff]  ;;  %v746_v55 = vld [vmem:[%s3681_s0 + $0x68] sm:$0xff]  ;;  %v2363_v57 = vld [vmem:[%s3683_s5 + $0x38] sm:$0xff] }
  0x11   :  { %v755_v56 = vpack.c.bf16 %v746_v55, %v745_v54  ;;  %932 = vmatpush.bf16.msra.mxu3 %v2363_v57  ;;  %v2362_v59 = vld [vmem:[%s3683_s5 + $0x30] sm:$0xff]  ;;  %v2361_v60 = vld [vmem:[%s3683_s5 + $0x28] sm:$0xff]  ;;  %v748_v62 = vld [vmem:[%s3681_s0 + $0x78] sm:$0xff] }
  0x12   :  { %299 = vperm.xlu1 %2403, %v208_v12   ;;  %v747_v61 = vld [vmem:[%s3681_s0 + $0x70] sm:$0xff]  ;;  %v2360_v4 = vld [vmem:[%s3683_s5 + $0x20] sm:$0xff]  ;;  %v2359_v5 = vld [vmem:[%s3683_s5 + $0x18] sm:$0xff] }
  0x13   :  { %296 = vperm.xlu0 %2402, %v207_v13   ;;  %242 = vperm.xlu2 %2404, %v189_v14   ;;  %v756_v3 = vpack.c.bf16 %v748_v62, %v747_v61  ;;  %v2358_v10 = vld [vmem:[%s3683_s5 + $0x10] sm:$0xff]  ;;  %v2357_v12 = vld [vmem:[%s3683_s5 + $0x8] sm:$0xff]  ;;  %v2356_v15 = vld [vmem:[%s3683_s5] sm:$0xff] }
  0x15   :  { %933 = vmatpush.bf16.msra.mxu3 %v2362_v59 }
  0x17   :  { %2131 = vmatmul.msk.bf16.gmra.mxu2 %vm762_vm1, %v750_v17 }
  0x19   :  { %934 = vmatpush.bf16.msra.mxu3 %v2361_v60 }
  0x1a   :  { %290 = vperm.xlu1 %2403, %v205_v18  }
  0x1b   :  { %245 = vperm.xlu0 %2402, %v190_v19   ;;  %293 = vperm.xlu2 %2404, %v206_v20   ;;  %v2715_v20 = vld [vmem:[%s3682_s4] ss:$0 sm:$0xff] }
  0x1d   :  { %935 = vmatpush.bf16.msra.mxu3 %v2360_v4 }
  0x21   :  { %936 = vmatpush.bf16.msra.mxu3 %v2359_v5 }
  0x22   :  { %239 = vperm.xlu1 %2403, %v188_v21  }
  0x23   :  { %284 = vperm.xlu2 %2404, %v203_v22   ;;  %236 = vperm.xlu0 %2402, %v187_v23  }
  0x25   :  { %937 = vmatpush.bf16.msra.mxu3 %v2358_v10 }
  0x27   :  { %2132 = vmatmul.msk.bf16.gmra.mxu2 %vm762_vm1, %v751_v26 }
  0x29   :  { %938 = vmatpush.bf16.msra.mxu3 %v2357_v12 }
  0x2a   :  { %230 = vperm.xlu1 %2403, %v185_v27  }
  0x2b   :  { %287 = vperm.xlu0 %2402, %v204_v28   ;;  %233 = vperm.xlu2 %2404, %v186_v29  }
  0x2d   :  { %939 = vmatpush.bf16.msra.mxu3 %v2356_v15 }
  0x32   :  { %281 = vperm.xlu1 %2403, %v202_v30  }
  0x33   :  { %278 = vperm.xlu0 %2402, %v201_v31   ;;  %224 = vperm.xlu2 %2404, %v183_v32  }
  0x37   :  { %2133 = vmatmul.msk.bf16.gmra.mxu2 %vm762_vm1, %v752_v35 }
  0x3a   :  { %272 = vperm.xlu1 %2403, %v199_v36  }
  0x3b   :  { %227 = vperm.xlu0 %2402, %v184_v37   ;;  %275 = vperm.xlu2 %2404, %v200_v38  }
  0x42   :  { %221 = vperm.xlu1 %2403, %v182_v39  }
  0x43   :  { %266 = vperm.xlu2 %2404, %v197_v40   ;;  %218 = vperm.xlu0 %2402, %v181_v41  }
  0x47   :  { %2134 = vmatmul.msk.bf16.gmra.mxu2 %vm762_vm1, %v753_v44 }
  0x4a   :  { %212 = vperm.xlu1 %2403, %v179_v45  }
  0x4b   :  { %269 = vperm.xlu0 %2402, %v198_v46   ;;  %215 = vperm.xlu2 %2404, %v180_v47  }
  0x52   :  { %263 = vperm.xlu1 %2403, %v196_v48   ;;  %v2745_v48 = vshrl.u32 %v45_v1, 7 }
  0x53   :  { %260 = vperm.xlu0 %2402, %v195_v49   ;;  %v64_v49 = vld [vmem:[%s3685_s2] sm:$0x3] }
  0x54   :  { %v47_v55 = vadd.s32 8, %v2745_v48 }
  0x57   :  { %2135 = vmatmul.msk.bf16.gmra.mxu2 %vm762_vm1, %v754_v52 }
  0x5d   :  { %v249_v53 = vpop.permute.xlu2 %248 }
  0x5e   :  { %vm319_vm8 = vcmp.eq.s32.totalorder %v2686_v6, %v249_v53 }
  0x65   :  { %v252_v58 = vpop.permute.xlu2 %251 }
  0x66   :  { %vm320_vm9 = vcmp.eq.s32.totalorder %v2686_v6, %v252_v58 }
  0x67   :  { %2136 = vmatmul.msk.bf16.gmra.mxu2 %vm762_vm1, %v755_v56  ;;  %vm2068_vm10 = vmpackc.low %vm320_vm9, %vm319_vm8  ;;  %v2754_v56 = vperm.slane %v64_v49, 0 }
  0x6d   :  { %v243_v63 = vpop.permute.xlu2 %242 }
  0x6e   :  { %vm317_vm0 = vcmp.eq.s32.totalorder %v2686_v6, %v243_v63  ;;  %v2766_v63 = vperm.slane %v64_v49, 1 }
  0x74   :  { %v303_v0 = vpop.permute.xlu1 %302 }
  0x75   :  { %v255_v2 = vpop.permute.xlu0 %254  ;;  %vm337_vm2 = vcmp.eq.s32.totalorder %v2686_v6, %v303_v0  ;;  %v294_v8 = vpop.permute.xlu2 %293 }
  0x76   :  { %vm321_vm4 = vcmp.eq.s32.totalorder %v2686_v6, %v255_v2  ;;  %vm334_vm14 = vcmp.eq.s32.totalorder %v2686_v6, %v294_v8  ;;  %v48_v8 = vadd.s32 16, %v2745_v48 }
  0x77   :  { %2137 = vmatmul.msk.bf16.gmra.mxu2 %vm762_vm1, %v756_v3 }
  0x7c   :  { %v306_v7 = vpop.permute.xlu1 %305 }
  0x7d   :  { %vm338_vm3 = vcmp.eq.s32.totalorder %v2686_v6, %v306_v7  ;;  %v258_v9 = vpop.permute.xlu0 %257  ;;  %v285_v16 = vpop.permute.xlu2 %284 }
  0x7e   :  { %vm322_vm5 = vcmp.eq.s32.totalorder %v2686_v6, %v258_v9  ;;  %vm2098_vm6 = vmpackc.low %vm338_vm3, %vm337_vm2  ;;  %vm331_vm9 = vcmp.eq.s32.totalorder %v2686_v6, %v285_v16  ;;  %v49_v9 = vadd.s32 24, %v2745_v48 }
  0x7f   :  { %vm2066_vm7 = vmpackc.low %vm322_vm5, %vm321_vm4  ;;  %2099 = vmatpush.bf16.msk.msra.mxu1 %vm2098_vm6, %v2445_v11 }
  0x80   :  { %2067 = vmatpush.bf16.msk.msra.mxu0 %vm2066_vm7, %v2445_v11 }
  0x84   :  { %2069 = vmatpush.bf16.msk.msra.mxu0 %vm2068_vm10, %v2445_v11  ;;  %v300_v13 = vpop.permute.xlu1 %299 }
  0x85   :  { %vm336_vm11 = vcmp.eq.s32.totalorder %v2686_v6, %v300_v13  ;;  %v297_v14 = vpop.permute.xlu0 %296  ;;  %v234_v21 = vpop.permute.xlu2 %233 }
  0x86   :  { %vm335_vm12 = vcmp.eq.s32.totalorder %v2686_v6, %v297_v14  ;;  %vm314_vm7 = vcmp.eq.s32.totalorder %v2686_v6, %v234_v21 }
  0x87   :  { %vm2100_vm13 = vmpackc.low %vm336_vm11, %vm335_vm12 }
  0x88   :  { %2101 = vmatpush.bf16.msk.msra.mxu1 %vm2100_vm13, %v2445_v11 }
  0x8a   :  { %v800_v18 = vpop.f32.mrf.mxu2 }
  0x8b   :  { %v801_v22 = vadd.f32 %v2715_v20, %v800_v18  ;;  %v51_v18 = vadd.s32 40, %v2745_v48 }
  0x8c   :  { %v291_v17 = vpop.permute.xlu1 %290 }
  0x8d   :  { %vm333_vm15 = vcmp.eq.s32.totalorder %v2686_v6, %v291_v17  ;;  %v246_v19 = vpop.permute.xlu0 %245  ;;  %v840_v26 = vmax.f32 %v801_v22, 0.0  ;;  %v225_v30 = vpop.permute.xlu2 %224  ;;  %v50_v17 = vadd.s32 32, %v2745_v48 }
  0x8e   :  { %vm2102_vm1 = vmpackc.low %vm334_vm14, %vm333_vm15  ;;  %vm318_vm2 = vcmp.eq.s32.totalorder %v2686_v6, %v246_v19 }
  0x8f   :  { %vm2070_vm3 = vmpackc.low %vm318_vm2, %vm317_vm0  ;;  %2103 = vmatpush.bf16.msk.msra.mxu1 %vm2102_vm1, %v2445_v11  ;;  %vm311_vm2 = vcmp.eq.s32.totalorder %v2686_v6, %v225_v30 }
  0x90   :  { %2071 = vmatpush.bf16.msk.msra.mxu0 %vm2070_vm3, %v2445_v11 }
  0x92   :  { %v802_v24 = vpop.f32.mrf.mxu2 }
  0x93   :  { %v803_v27 = vadd.f32 %v2715_v20, %v802_v24 }
  0x94   :  { %v240_v23 = vpop.permute.xlu1 %239 }
  0x95   :  { %vm316_vm4 = vcmp.eq.s32.totalorder %v2686_v6, %v240_v23  ;;  %v237_v25 = vpop.permute.xlu0 %236  ;;  %v841_v28 = vmax.f32 %v803_v27, 0.0  ;;  %v276_v40 = vpop.permute.xlu2 %275  ;;  %v52_v27 = vadd.s32 48, %v2745_v48 }
  0x96   :  { %vm315_vm5 = vcmp.eq.s32.totalorder %v2686_v6, %v237_v25  ;;  %vm328_vm0 = vcmp.eq.s32.totalorder %v2686_v6, %v276_v40 }
  0x97   :  { %vm2072_vm6 = vmpackc.low %vm316_vm4, %vm315_vm5  ;;  %v856_v29 = vpack.c.bf16 %v841_v28, %v840_v26  ;;  %v53_v28 = vadd.s32 56, %v2745_v48 }
  0x98   :  { %2073 = vmatpush.bf16.msk.msra.mxu0 %vm2072_vm6, %v2445_v11 }
  0x99   :  { %940 = vmatmul.bf16.vlgmr.msra.gmra.mxu3 %v856_v29 }
  0x9a   :  { %v805_v32 = vpop.f32.mrf.mxu2 }
  0x9b   :  { %v806_v34 = vadd.f32 %v2715_v20, %v805_v32 }
  0x9c   :  { %v231_v31 = vpop.permute.xlu1 %230 }
  0x9d   :  { %v288_v33 = vpop.permute.xlu0 %287  ;;  %vm313_vm8 = vcmp.eq.s32.totalorder %v2686_v6, %v231_v31  ;;  %v842_v38 = vmax.f32 %v806_v34, 0.0  ;;  %v267_v46 = vpop.permute.xlu2 %266 }
  0x9e   :  { %vm332_vm10 = vcmp.eq.s32.totalorder %v2686_v6, %v288_v33  ;;  %vm2074_vm11 = vmpackc.low %vm314_vm7, %vm313_vm8 }
  0x9f   :  { %vm2104_vm12 = vmpackc.low %vm332_vm10, %vm331_vm9  ;;  %2075 = vmatpush.bf16.msk.msra.mxu0 %vm2074_vm11, %v2445_v11  ;;  %vm67_vm9 = vcmp.eq.s32.totalorder %v2745_v48, %v2754_v56  ;;  %vm69_vm10 = vcmp.eq.s32.totalorder %v47_v55, %v2754_v56 }
  0xa0   :  { %2105 = vmatpush.bf16.msk.msra.mxu1 %vm2104_vm12, %v2445_v11 }
  0xa2   :  { %v807_v36 = vpop.f32.mrf.mxu2 }
  0xa3   :  { %v808_v39 = vadd.f32 %v2715_v20, %v807_v36  ;;  %v54_v36 = vadd.s32 64, %v2745_v48 }
  0xa4   :  { %v282_v35 = vpop.permute.xlu1 %281 }
  0xa5   :  { %v279_v37 = vpop.permute.xlu0 %278  ;;  %vm330_vm13 = vcmp.eq.s32.totalorder %v2686_v6, %v282_v35  ;;  %v843_v41 = vmax.f32 %v808_v39, 0.0  ;;  %v216_v59 = vpop.permute.xlu2 %215  ;;  %v2371_v39 = vld [vmem:[%s3686_s7 + $0x38] sm:$0xff] }
  0xa6   :  { %vm329_vm14 = vcmp.eq.s32.totalorder %v2686_v6, %v279_v37  ;;  %vm308_vm11 = vcmp.eq.s32.totalorder %v2686_v6, %v216_v59  ;;  %v55_v37 = vadd.s32 72, %v2745_v48  ;;  %1053 = vmatpush.bf16.msrb.mxu2 %v2371_v39 }
  0xa7   :  { %vm2106_vm15 = vmpackc.low %vm330_vm13, %vm329_vm14  ;;  %v857_v42 = vpack.c.bf16 %v843_v41, %v842_v38  ;;  %vm325_vm14 = vcmp.eq.s32.totalorder %v2686_v6, %v267_v46  ;;  %v2370_v41 = vld [vmem:[%s3686_s7 + $0x30] sm:$0xff] }
  0xa8   :  { %2107 = vmatpush.bf16.msk.msra.mxu1 %vm2106_vm15, %v2445_v11  ;;  %vm2082_vm13 = vmpackc.low %vm69_vm10, %vm67_vm9  ;;  %vm73_vm9 = vcmp.eq.s32.totalorder %v49_v9, %v2754_v56 }
  0xa9   :  { %945 = vmatmul.bf16.gmra.mxu3 %v857_v42 }
  0xaa   :  { %v810_v44 = vpop.f32.mrf.mxu2  ;;  %1054 = vmatpush.bf16.msrb.mxu2 %v2370_v41 }
  0xab   :  { %v811_v47 = vadd.f32 %v2715_v20, %v810_v44 }
  0xac   :  { %v273_v43 = vpop.permute.xlu1 %272 }
  0xad   :  { %vm327_vm1 = vcmp.eq.s32.totalorder %v2686_v6, %v273_v43  ;;  %v228_v45 = vpop.permute.xlu0 %227  ;;  %v844_v53 = vmax.f32 %v811_v47, 0.0  ;;  %v2369_v43 = vld [vmem:[%s3686_s7 + $0x28] sm:$0xff] }
  0xae   :  { %vm2108_vm3 = vmpackc.low %vm328_vm0, %vm327_vm1  ;;  %vm312_vm4 = vcmp.eq.s32.totalorder %v2686_v6, %v228_v45  ;;  %1055 = vmatpush.bf16.msrb.mxu2 %v2369_v43  ;;  %v2368_v45 = vld [vmem:[%s3686_s7 + $0x20] sm:$0xff] }
  0xaf   :  { %vm2076_vm5 = vmpackc.low %vm312_vm4, %vm311_vm2  ;;  %2109 = vmatpush.bf16.msk.msra.mxu1 %vm2108_vm3, %v2445_v11  ;;  %vm68_vm2 = vcmp.eq.s32.totalorder %v2745_v48, %v2766_v63  ;;  %vm70_vm4 = vcmp.eq.s32.totalorder %v47_v55, %v2766_v63  ;;  %v2364_v55 = vld [vmem:[%s3686_s7] sm:$0xff] }
  0xb0   :  { %2077 = vmatpush.bf16.msk.msra.mxu0 %vm2076_vm5, %v2445_v11 }
  0xb2   :  { %v812_v51 = vpop.f32.mrf.mxu2  ;;  %1056 = vmatpush.bf16.msrb.mxu2 %v2368_v45 }
  0xb3   :  { %v813_v54 = vadd.f32 %v2715_v20, %v812_v51  ;;  %v57_v51 = vadd.s32 88, %v2745_v48 }
  0xb4   :  { %v222_v50 = vpop.permute.xlu1 %221 }
  0xb5   :  { %vm310_vm6 = vcmp.eq.s32.totalorder %v2686_v6, %v222_v50  ;;  %v219_v52 = vpop.permute.xlu0 %218  ;;  %v845_v57 = vmax.f32 %v813_v54, 0.0  ;;  %v56_v50 = vadd.s32 80, %v2745_v48  ;;  %v2365_v54 = vld [vmem:[%s3686_s7 + $0x8] sm:$0xff] }
  0xb6   :  { %vm309_vm7 = vcmp.eq.s32.totalorder %v2686_v6, %v219_v52 }
  0xb7   :  { %vm2078_vm8 = vmpackc.low %vm310_vm6, %vm309_vm7  ;;  %v858_v58 = vpack.c.bf16 %v845_v57, %v844_v53  ;;  %v2367_v53 = vld [vmem:[%s3686_s7 + $0x18] sm:$0xff]  ;;  %v58_v57 = vadd.s32 96, %v2745_v48 }
  0xb8   :  { %2079 = vmatpush.bf16.msk.msra.mxu0 %vm2078_vm8, %v2445_v11  ;;  %vm2114_vm7 = vmpackc.low %vm70_vm4, %vm68_vm2  ;;  %vm71_vm8 = vcmp.eq.s32.totalorder %v48_v8, %v2754_v56  ;;  %vm78_vm2 = vcmp.eq.s32.totalorder %v51_v18, %v2766_v63  ;;  %vm79_vm4 = vcmp.eq.s32.totalorder %v52_v27, %v2754_v56  ;;  %1057 = vmatpush.bf16.msrb.mxu2 %v2367_v53 }
  0xb9   :  { %950 = vmatmul.bf16.gmra.mxu3 %v858_v58  ;;  %vm2084_vm10 = vmpackc.low %vm73_vm9, %vm71_vm8  ;;  %vm82_vm8 = vcmp.eq.s32.totalorder %v53_v28, %v2766_v63  ;;  %v59_v58 = vadd.s32 104, %v2745_v48 }
  0xba   :  { %v815_v61 = vpop.f32.mrf.mxu2 }
  0xbb   :  { %v816_v0 = vadd.f32 %v2715_v20, %v815_v61 }
  0xbc   :  { %v213_v60 = vpop.permute.xlu1 %212 }
  0xbd   :  { %v270_v62 = vpop.permute.xlu0 %269  ;;  %vm307_vm12 = vcmp.eq.s32.totalorder %v2686_v6, %v213_v60  ;;  %v846_v4 = vmax.f32 %v816_v0, 0.0  ;;  %v2857_v60 = vld [vmem:[%s3684_s6] ss:$0 sm:$0xff] }
  0xbe   :  { %vm326_vm15 = vcmp.eq.s32.totalorder %v2686_v6, %v270_v62  ;;  %vm2080_vm0 = vmpackc.low %vm308_vm11, %vm307_vm12  ;;  %vm72_vm11 = vcmp.eq.s32.totalorder %v48_v8, %v2766_v63  ;;  %vm74_vm12 = vcmp.eq.s32.totalorder %v49_v9, %v2766_v63 }
  0xbf   :  { %vm2110_vm1 = vmpackc.low %vm326_vm15, %vm325_vm14  ;;  %2081 = vmatpush.bf16.msk.msra.mxu0 %vm2080_vm0, %v2445_v11  ;;  %vm75_vm14 = vcmp.eq.s32.totalorder %v50_v17, %v2754_v56  ;;  %vm77_vm15 = vcmp.eq.s32.totalorder %v51_v18, %v2754_v56 }
  0xc0   :  { %2111 = vmatpush.bf16.msk.msra.mxu1 %vm2110_vm1, %v2445_v11  ;;  %vm2086_vm0 = vmpackc.low %vm77_vm15, %vm75_vm14  ;;  %vm76_vm1 = vcmp.eq.s32.totalorder %v50_v17, %v2766_v63  ;;  %vm86_vm14 = vcmp.eq.s32.totalorder %v55_v37, %v2766_v63 }
  0xc2   :  { %2083 = vmatmul.msk.bf16.vlgmr.msra.gmra.mxu0 %vm2082_vm13, %v2445_v11  ;;  %v817_v2 = vpop.f32.mrf.mxu2  ;;  %vm2116_vm13 = vmpackc.low %vm74_vm12, %vm72_vm11  ;;  %vm85_vm11 = vcmp.eq.s32.totalorder %v55_v37, %v2754_v56 }
  0xc3   :  { %v818_v5 = vadd.f32 %v2715_v20, %v817_v2  ;;  %v61_v2 = vadd.s32 120, %v2745_v48 }
  0xc4   :  { %v264_v1 = vpop.permute.xlu1 %263 }
  0xc5   :  { %v261_v3 = vpop.permute.xlu0 %260  ;;  %vm324_vm3 = vcmp.eq.s32.totalorder %v2686_v6, %v264_v1  ;;  %v847_v7 = vmax.f32 %v818_v5, 0.0  ;;  %v60_v1 = vadd.s32 112, %v2745_v48 }
  0xc6   :  { %vm323_vm5 = vcmp.eq.s32.totalorder %v2686_v6, %v261_v3 }
  0xc7   :  { %vm2112_vm6 = vmpackc.low %vm324_vm3, %vm323_vm5  ;;  %v859_v10 = vpack.c.bf16 %v847_v7, %v846_v4  ;;  %vm81_vm5 = vcmp.eq.s32.totalorder %v53_v28, %v2754_v56 }
  0xc8   :  { %2113 = vmatpush.bf16.msk.msra.mxu1 %vm2112_vm6, %v2445_v11  ;;  %vm2118_vm3 = vmpackc.low %vm78_vm2, %vm76_vm1  ;;  %vm89_vm1 = vcmp.eq.s32.totalorder %v57_v51, %v2754_v56 }
  0xc9   :  { %955 = vmatmul.bf16.gmra.mxu3 %v859_v10  ;;  %vm2088_vm6 = vmpackc.low %vm81_vm5, %vm79_vm4  ;;  %vm90_vm4 = vcmp.eq.s32.totalorder %v57_v51, %v2766_v63 }
  0xca   :  { %v820_v12 = vpop.f32.mrf.mxu2 }
  0xcb   :  { %2115 = vmatmul.msk.bf16.vlgmr.msra.gmra.mxu1 %vm2114_vm7, %v2445_v11  ;;  %v821_v6 = vadd.f32 %v2715_v20, %v820_v12  ;;  %vm80_vm7 = vcmp.eq.s32.totalorder %v52_v27, %v2766_v63 }
  0xcc   :  { %vm2120_vm9 = vmpackc.low %vm82_vm8, %vm80_vm7  ;;  %vm93_vm7 = vcmp.eq.s32.totalorder %v59_v58, %v2754_v56 }
  0xcd   :  { %v848_v14 = vmax.f32 %v821_v6, 0.0 }
  0xd2   :  { %2085 = vmatmul.msk.bf16.gmra.mxu0 %vm2084_vm10, %v2445_v11  ;;  %v822_v13 = vpop.f32.mrf.mxu2  ;;  %vm83_vm10 = vcmp.eq.s32.totalorder %v54_v36, %v2754_v56 }
  0xd3   :  { %v823_v15 = vadd.f32 %v2715_v20, %v822_v13  ;;  %vm2090_vm12 = vmpackc.low %vm85_vm11, %vm83_vm10  ;;  %vm94_vm10 = vcmp.eq.s32.totalorder %v59_v58, %v2766_v63 }
  0xd5   :  { %v849_v16 = vmax.f32 %v823_v15, 0.0 }
  0xd7   :  { %v860_v19 = vpack.c.bf16 %v849_v16, %v848_v14 }
  0xd9   :  { %960 = vmatmul.bf16.gmra.mxu3 %v860_v19 }
  0xda   :  { %v825_v21 = vpop.f32.mrf.mxu2 }
  0xdb   :  { %2117 = vmatmul.msk.bf16.gmra.mxu1 %vm2116_vm13, %v2445_v11  ;;  %v826_v22 = vadd.f32 %v2715_v20, %v825_v21  ;;  %vm84_vm13 = vcmp.eq.s32.totalorder %v54_v36, %v2766_v63 }
  0xdc   :  { %vm2122_vm15 = vmpackc.low %vm86_vm14, %vm84_vm13  ;;  %vm97_vm13 = vcmp.eq.s32.totalorder %v61_v2, %v2754_v56 }
  0xdd   :  { %v850_v24 = vmax.f32 %v826_v22, 0.0 }
  0xe2   :  { %2087 = vmatmul.msk.bf16.gmra.mxu0 %vm2086_vm0, %v2445_v11  ;;  %v827_v23 = vpop.f32.mrf.mxu2  ;;  %vm87_vm0 = vcmp.eq.s32.totalorder %v56_v50, %v2754_v56 }
  0xe3   :  { %v828_v25 = vadd.f32 %v2715_v20, %v827_v23  ;;  %vm2092_vm2 = vmpackc.low %vm89_vm1, %vm87_vm0  ;;  %vm98_vm0 = vcmp.eq.s32.totalorder %v61_v2, %v2766_v63 }
  0xe5   :  { %v851_v26 = vmax.f32 %v828_v25, 0.0 }
  0xe7   :  { %v861_v29 = vpack.c.bf16 %v851_v26, %v850_v24 }
  0xe9   :  { %965 = vmatmul.bf16.gmra.mxu3 %v861_v29 }
  0xea   :  { %v830_v30 = vpop.f32.mrf.mxu2 }
  0xeb   :  { %2119 = vmatmul.msk.bf16.gmra.mxu1 %vm2118_vm3, %v2445_v11  ;;  %v831_v31 = vadd.f32 %v2715_v20, %v830_v30  ;;  %vm88_vm3 = vcmp.eq.s32.totalorder %v56_v50, %v2766_v63 }
  0xec   :  { %vm2124_vm5 = vmpackc.low %vm90_vm4, %vm88_vm3 }
  0xed   :  { %v852_v33 = vmax.f32 %v831_v31, 0.0 }
  0xf2   :  { %2089 = vmatmul.msk.bf16.gmra.mxu0 %vm2088_vm6, %v2445_v11  ;;  %v832_v32 = vpop.f32.mrf.mxu2  ;;  %vm91_vm6 = vcmp.eq.s32.totalorder %v58_v57, %v2754_v56 }
  0xf3   :  { %v833_v34 = vadd.f32 %v2715_v20, %v832_v32  ;;  %vm2094_vm8 = vmpackc.low %vm93_vm7, %vm91_vm6 }
  0xf5   :  { %v853_v35 = vmax.f32 %v833_v34, 0.0 }
  0xf7   :  { %v862_v38 = vpack.c.bf16 %v853_v35, %v852_v33 }
  0xf9   :  { %970 = vmatmul.bf16.gmra.mxu3 %v862_v38 }
  0xfa   :  { %v835_v40 = vpop.f32.mrf.mxu2 }
  0xfb   :  { %2121 = vmatmul.msk.bf16.gmra.mxu1 %vm2120_vm9, %v2445_v11  ;;  %v836_v42 = vadd.f32 %v2715_v20, %v835_v40  ;;  %vm92_vm9 = vcmp.eq.s32.totalorder %v58_v57, %v2766_v63 }
  0xfc   :  { %vm2126_vm11 = vmpackc.low %vm94_vm10, %vm92_vm9 }
  0xfd   :  { %v854_v46 = vmax.f32 %v836_v42, 0.0 }
 0x102   :  { %2091 = vmatmul.msk.bf16.gmra.mxu0 %vm2090_vm12, %v2445_v11  ;;  %v837_v44 = vpop.f32.mrf.mxu2  ;;  %vm95_vm12 = vcmp.eq.s32.totalorder %v60_v1, %v2754_v56 }
 0x103   :  { %v838_v47 = vadd.f32 %v2715_v20, %v837_v44  ;;  %v2366_v20 = vld [vmem:[%s3686_s7 + $0x10] sm:$0xff]  ;;  %vm2096_vm14 = vmpackc.low %vm97_vm13, %vm95_vm12 }
 0x104   :  { %1058 = vmatpush.bf16.msrb.mxu2 %v2366_v20 }
 0x105   :  { %v855_v49 = vmax.f32 %v838_v47, 0.0 }
 0x107   :  { %v863_v52 = vpack.c.bf16 %v855_v49, %v854_v46 }
 0x108   :  { %1059 = vmatpush.bf16.msrb.mxu2 %v2365_v54 }
 0x109   :  { %975 = vmatmul.bf16.gmra.mxu3 %v863_v52 }
 0x10b   :  { %2123 = vmatmul.msk.bf16.gmra.mxu1 %vm2122_vm15, %v2445_v11  ;;  %vm96_vm15 = vcmp.eq.s32.totalorder %v60_v1, %v2766_v63 }
 0x10c   :  { %1060 = vmatpush.bf16.msrb.mxu2 %v2364_v55  ;;  %vm2128_vm1 = vmpackc.low %vm98_vm0, %vm96_vm15 }
 0x112   :  { %2093 = vmatmul.msk.bf16.gmra.mxu0 %vm2092_vm2, %v2445_v11 }
 0x11b   :  { %2125 = vmatmul.msk.bf16.gmra.mxu1 %vm2124_vm5, %v2445_v11 }
 0x11c   :  { %v941_v59 = vpop.f32.mrf.mxu3 }
 0x11d   :  { %v942_v61 = vadd.f32 %v2857_v60, %v941_v59 }
 0x122   :  { %2095 = vmatmul.msk.bf16.gmra.mxu0 %vm2094_vm8, %v2445_v11 }
 0x124   :  { %v943_v62 = vpop.f32.mrf.mxu3 }
 0x125   :  { %v944_v0 = vadd.f32 %v2857_v60, %v943_v62 }
 0x127   :  { %v981_v3 = vpack.c.bf16 %v944_v0, %v942_v61 }
 0x129   :  { %1061 = vmatmul.bf16.vlgmr.msrb.gmra.mxu2 %v981_v3 }
 0x12b   :  { %2127 = vmatmul.msk.bf16.gmra.mxu1 %vm2126_vm11, %v2445_v11 }
 0x12c   :  { %v946_v4 = vpop.f32.mrf.mxu3 }
 0x12d   :  { %v947_v5 = vadd.f32 %v2857_v60, %v946_v4 }
 0x132   :  { %2097 = vmatmul.msk.bf16.gmra.mxu0 %vm2096_vm14, %v2445_v11 }
 0x134   :  { %v948_v7 = vpop.f32.mrf.mxu3 }
 0x135   :  { %v949_v48 = vadd.f32 %v2857_v60, %v948_v7 }
 0x137   :  { %v982_v8 = vpack.c.bf16 %v949_v48, %v947_v5 }
 0x139   :  { %1066 = vmatmul.bf16.gmra.mxu2 %v982_v8 }
 0x13b   :  { %2129 = vmatmul.msk.bf16.gmra.mxu1 %vm2128_vm1, %v2445_v11 }
 0x13c   :  { %v951_v9 = vpop.f32.mrf.mxu3 }
 0x13d   :  { %v952_v10 = vadd.f32 %v2857_v60, %v951_v9 }
 0x13f   :  { %v428_v56 = vpop.f32.mrf.mxu0 }
 0x144   :  { %v953_v12 = vpop.f32.mrf.mxu3 }
 0x145   :  { %v954_v13 = vadd.f32 %v2857_v60, %v953_v12 }
 0x147   :  { %v2876_v6 = vpop.f32.mrf.mxu0  ;;  %v983_v15 = vpack.c.bf16 %v954_v13, %v952_v10 }
 0x148   :  { %v477_v63 = vpop.f32.mrf.mxu1 }
 0x149   :  { %v2879_v14 = vadd.f32 %v477_v63, %v428_v56  ;;  %1071 = vmatmul.bf16.gmra.mxu2 %v983_v15 }
 0x14c   :  { %v956_v16 = vpop.f32.mrf.mxu3 }
 0x14d   :  { %v957_v11 = vadd.f32 %v2857_v60, %v956_v16 }
 0x14f   :  { %v433_v17 = vpop.f32.mrf.mxu0 }
 0x150   :  { %v2881_v18 = vpop.f32.mrf.mxu1 }
 0x154   :  { %v958_v19 = vpop.f32.mrf.mxu3 }
 0x155   :  { %v959_v22 = vadd.f32 %v2857_v60, %v958_v19 }
 0x157   :  { %v2884_v21 = vpop.f32.mrf.mxu0  ;;  %v984_v25 = vpack.c.bf16 %v959_v22, %v957_v11 }
 0x158   :  { %v482_v23 = vpop.f32.mrf.mxu1 }
 0x159   :  { %v2887_v24 = vadd.f32 %v482_v23, %v433_v17  ;;  %1076 = vmatmul.bf16.gmra.mxu2 %v984_v25 }
 0x15c   :  { %v961_v26 = vpop.f32.mrf.mxu3 }
 0x15d   :  { %v962_v29 = vadd.f32 %v2857_v60, %v961_v26 }
 0x15f   :  { %v438_v27 = vpop.f32.mrf.mxu0 }
 0x160   :  { %v2889_v28 = vpop.f32.mrf.mxu1 }
 0x164   :  { %v963_v30 = vpop.f32.mrf.mxu3 }
 0x165   :  { %v964_v32 = vadd.f32 %v2857_v60, %v963_v30 }
 0x167   :  { %v2892_v31 = vpop.f32.mrf.mxu0  ;;  %v985_v35 = vpack.c.bf16 %v964_v32, %v962_v29  ;;  %v2927_v32 = vadd.f32 %v2881_v18, %v2876_v6 }
 0x168   :  { %v487_v33 = vpop.f32.mrf.mxu1 }
 0x169   :  { %v2895_v34 = vadd.f32 %v487_v33, %v438_v27  ;;  %1081 = vmatmul.bf16.gmra.mxu2 %v985_v35  ;;  %v2933_v33 = vadd.f32 %v2889_v28, %v2884_v21 }
 0x16c   :  { %v966_v36 = vpop.f32.mrf.mxu3 }
 0x16d   :  { %v967_v39 = vadd.f32 %v2857_v60, %v966_v36 }
 0x16f   :  { %v443_v37 = vpop.f32.mrf.mxu0 }
 0x170   :  { %v2897_v38 = vpop.f32.mrf.mxu1 }
 0x171   :  { %v2941_v36 = vadd.f32 %v2897_v38, %v2892_v31 }
 0x174   :  { %v968_v40 = vpop.f32.mrf.mxu3 }
 0x175   :  { %v969_v42 = vadd.f32 %v2857_v60, %v968_v40 }
 0x177   :  { %v445_v41 = vpop.f32.mrf.mxu0  ;;  %v986_v45 = vpack.c.bf16 %v969_v42, %v967_v39 }
 0x178   :  { %v492_v43 = vpop.f32.mrf.mxu1 }
 0x179   :  { %v2901_v44 = vadd.f32 %v492_v43, %v443_v37  ;;  %1086 = vmatmul.bf16.gmra.mxu2 %v986_v45 }
 0x17c   :  { %v971_v46 = vpop.f32.mrf.mxu3 }
 0x17d   :  { %v972_v50 = vadd.f32 %v2857_v60, %v971_v46 }
 0x17f   :  { %v448_v47 = vpop.f32.mrf.mxu0 }
 0x180   :  { %v494_v49 = vpop.f32.mrf.mxu1 }
 0x181   :  { %v2915_v22 = vadd.f32 %v494_v49, %v445_v41 }
 0x184   :  { %v973_v51 = vpop.f32.mrf.mxu3 }
 0x185   :  { %v974_v53 = vadd.f32 %v2857_v60, %v973_v51 }
 0x187   :  { %v450_v52 = vpop.f32.mrf.mxu0  ;;  %v987_v54 = vpack.c.bf16 %v974_v53, %v972_v50 }
 0x188   :  { %v497_v20 = vpop.f32.mrf.mxu1 }
 0x189   :  { %1091 = vmatmul.bf16.gmra.mxu2 %v987_v54  ;;  %v498_v59 = vadd.f32 %v497_v20, %v448_v47 }
 0x18c   :  { %v976_v55 = vpop.f32.mrf.mxu3 }
 0x18d   :  { %v977_v0 = vadd.f32 %v2857_v60, %v976_v55 }
 0x18f   :  { %v453_v57 = vpop.f32.mrf.mxu0 }
 0x190   :  { %v499_v58 = vpop.f32.mrf.mxu1 }
 0x191   :  { %v500_v61 = vadd.f32 %v499_v58, %v450_v52 }
 0x193   :  { %v2905_v62 = vpack.c.bf16 %v500_v61, %v498_v59 }
 0x194   :  { %v978_v1 = vpop.f32.mrf.mxu3 }
 0x195   :  { %v979_v2 = vadd.f32 %v2857_v60, %v978_v1 }
 0x197   :  { %v455_v3 = vpop.f32.mrf.mxu0  ;;  %v988_v7 = vpack.c.bf16 %v979_v2, %v977_v0 }
 0x198   :  { %v502_v4 = vpop.f32.mrf.mxu1 }
 0x199   :  { %v503_v5 = vadd.f32 %v502_v4, %v453_v57  ;;  %1096 = vmatmul.bf16.gmra.mxu2 %v988_v7 }
 0x19b   :  { %537 = vadd.xlane.f32.xlu2 %v503_v5 }
 0x19f   :  { %v458_v9 = vpop.f32.mrf.mxu0 }
 0x1a0   :  { %v504_v48 = vpop.f32.mrf.mxu1 }
 0x1a1   :  { %v505_v8 = vadd.f32 %v504_v48, %v455_v3 }
 0x1a3   :  { %v2909_v56 = vpack.c.bf16 %v505_v8, %v503_v5 }
 0x1a7   :  { %v460_v13 = vpop.f32.mrf.mxu0 }
 0x1a8   :  { %v507_v10 = vpop.f32.mrf.mxu1 }
 0x1a9   :  { %v508_v12 = vadd.f32 %v507_v10, %v458_v9 }
 0x1ab   :  { %541 = vadd.xlane.f32.xlu1 %v508_v12 }
 0x1ac   :  { %v2913_v60 = vpop.f32.mrf.mxu2 }
 0x1af   :  { %v463_v17 = vpop.f32.mrf.mxu0 }
 0x1b0   :  { %v509_v63 = vpop.f32.mrf.mxu1 }
 0x1b1   :  { %v510_v15 = vadd.f32 %v509_v63, %v460_v13 }
 0x1b3   :  { %v2911_v16 = vpack.c.bf16 %v510_v15, %v508_v12  ;;  %543 = vadd.xlane.f32.xlu2 %v510_v15  ;;  %533 = vadd.xlane.f32.xlu1 %v498_v59 }
 0x1b4   :  { %v2918_v23 = vpop.f32.mrf.mxu2 }
 0x1b7   :  { %v465_v25 = vpop.f32.mrf.mxu0 }
 0x1b8   :  { %v512_v11 = vpop.f32.mrf.mxu1 }
 0x1b9   :  { %v513_v19 = vadd.f32 %v512_v11, %v463_v17 }
 0x1bb   :  { %545 = vadd.xlane.f32.xlu2 %v513_v19  ;;  %531 = vadd.xlane.f32.xlu1 %v2915_v22 }
 0x1bc   :  { %v2923_v30 = vpop.f32.mrf.mxu2 }
 0x1c0   :  { %v514_v26 = vpop.f32.mrf.mxu1 }
 0x1c1   :  { %v515_v27 = vadd.f32 %v514_v26, %v465_v25 }
 0x1c3   :  { %547 = vadd.xlane.f32.xlu0 %v515_v27  ;;  %v2920_v29 = vpack.c.bf16 %v515_v27, %v513_v19  ;;  %535 = vadd.xlane.f32.xlu2 %v500_v61 }
 0x1c4   :  { %521 = vadd.xlane.f32.xlu1 %v2887_v24  ;;  %v2935_v35 = vpop.f32.mrf.mxu2 }
 0x1c5   :  { %3694 = vst [vmem:[#allocation2_spill] sm:$0xff] %v2920_v29 }
 0x1cb   :  { %539 = vadd.xlane.f32.xlu0 %v505_v8  ;;  %525 = vadd.xlane.f32.xlu2 %v2895_v34 }
 0x1cc   :  { %519 = vadd.xlane.f32.xlu1 %v2927_v32  ;;  %v2944_v6 = vpop.f32.mrf.mxu2 }
 0x1d3   :  { %529 = vadd.xlane.f32.xlu0 %v2901_v44  ;;  %523 = vadd.xlane.f32.xlu2 %v2933_v33 }
 0x1d4   :  { %v2947_v18 = vpop.f32.mrf.mxu2 }
 0x1db   :  { %527 = vadd.xlane.f32.xlu0 %v2941_v36 }
 0x1dc   :  { %v2949_v21 = vpop.f32.mrf.mxu2 }
 0x1e3   :  { %517 = vadd.xlane.f32.xlu0 %v2879_v14 }
 0x1e4   :  { %v2951_v28 = vpop.f32.mrf.mxu2 }
 0x1ec   :  { %v2953_v37 = vpop.f32.mrf.mxu2 }
 0x1f4   :  { %v2955_v39 = vpop.f32.mrf.mxu2 }
 0x1fc   :  { %v2957_v40 = vpop.f32.mrf.mxu2 }
 0x204   :  { %v2959_v41 = vpop.f32.mrf.mxu2 }
 0x20c   :  { %v2969_v49 = vpop.f32.mrf.mxu2 }
 0x20e   :  { %v538_v31 = vpop.xlane.xlu2 %537 }
 0x20f   :  { %v2961_v42 = vadd.f32 1.0, %v538_v31 }
 0x211   :  { %2412 = vrsqrt.f32 %v2961_v42  ;;  %vm671_vm4 = vweird.f32 %v2961_v42 }
 0x214   :  { %v2990_v61 = vpop.f32.mrf.mxu2 }
 0x217   :  { %v2974_v53 = vpop.eup %2412 }
 0x218   :  { %v666_v57 = vmul.f32 %v2974_v53, %v2961_v42  ;;  %vm672_vm14 = vweird.f32 %v2974_v53 }
 0x219   :  { %vm673_vm0 = vmor %vm671_vm4, %vm672_vm14 }
 0x21a   :  { %v667_v7 = vmul.f32 %v2974_v53, %v666_v57 }
 0x21c   :  { %v668_v63 = vmul.f32 0.5, %v667_v7 }
 0x21e   :  { %v542_v38 = vpop.xlane.xlu1 %541 }
 0x21f   :  { %v2963_v46 = vadd.f32 1.0, %v542_v38 }
 0x221   :  { %2414 = vrsqrt.f32 %v2963_v46  ;;  %vm691_vm2 = vweird.f32 %v2963_v46 }
 0x226   :  { %v544_v43 = vpop.xlane.xlu2 %543  ;;  %v534_v45 = vpop.xlane.xlu1 %533 }
 0x227   :  { %v2965_v47 = vadd.f32 1.0, %v544_v43  ;;  %v2976_v20 = vpop.eup %2414  ;;  %v2978_v54 = vadd.f32 1.0, %v534_v45 }
 0x228   :  { %v686_v58 = vmul.f32 %v2976_v20, %v2963_v46  ;;  %vm692_vm3 = vweird.f32 %v2976_v20 }
 0x229   :  { %2416 = vrsqrt.f32 %v2965_v47  ;;  %vm701_vm5 = vweird.f32 %v2965_v47  ;;  %vm3048_vm9 = vmor %vm691_vm2, %vm692_vm3 }
 0x22a   :  { %v687_v48 = vmul.f32 %v2976_v20, %v686_v58  ;;  %v1097_v58 = vpop.f32.mrf.mxu2 }
 0x22c   :  { %v688_v15 = vmul.f32 0.5, %v687_v48 }
 0x22e   :  { %v546_v50 = vpop.xlane.xlu2 %545  ;;  %v532_v51 = vpop.xlane.xlu1 %531 }
 0x22f   :  { %v2972_v52 = vadd.f32 1.0, %v546_v50  ;;  %v2981_v55 = vpop.eup %2416  ;;  %v2987_v59 = vadd.f32 1.0, %v532_v51  ;;  %v669_v50 = vsub.f32 1.5, %v668_v63  ;;  %v689_v51 = vsub.f32 1.5, %v688_v15 }
 0x230   :  { %v696_v0 = vmul.f32 %v2981_v55, %v2965_v47  ;;  %vm702_vm7 = vweird.f32 %v2981_v55 }
 0x231   :  { %2418 = vrsqrt.f32 %v2972_v52  ;;  %vm711_vm8 = vweird.f32 %v2972_v52  ;;  %vm703_vm13 = vmor %vm701_vm5, %vm702_vm7 }
 0x232   :  { %2420 = vrsqrt.f32 %v2978_v54  ;;  %v697_v10 = vmul.f32 %v2981_v55, %v696_v0 }
 0x233   :  { %2422 = vrsqrt.f32 %v2987_v59 }
 0x234   :  { %v698_v19 = vmul.f32 0.5, %v697_v10 }
 0x236   :  { %v548_v1 = vpop.xlane.xlu0 %547  ;;  %v536_v2 = vpop.xlane.xlu2 %535  ;;  %v699_v7 = vsub.f32 1.5, %v698_v19 }
 0x237   :  { %v2994_v3 = vpop.eup %2418  ;;  %v2996_v4 = vadd.f32 1.0, %v548_v1  ;;  %v2998_v5 = vadd.f32 1.0, %v536_v2  ;;  %v522_v9 = vpop.xlane.xlu1 %521 }
 0x238   :  { %v706_v8 = vmul.f32 %v2994_v3, %v2972_v52  ;;  %v3009_v13 = vpop.eup %2420  ;;  %v3025_v2 = vadd.f32 1.0, %v522_v9  ;;  %v690_v9 = vmul.f32 %v2976_v20, %v689_v51  ;;  %vm712_vm6 = vweird.f32 %v2994_v3 }
 0x239   :  { %2424 = vrsqrt.f32 %v2996_v4  ;;  %v3011_v11 = vpop.eup %2422  ;;  %v646_v25 = vmul.f32 %v3009_v13, %v2978_v54  ;;  %vm713_vm11 = vmor %vm711_vm8, %vm712_vm6  ;;  %vm721_vm12 = vweird.f32 %v2996_v4  ;;  %vm652_vm1 = vweird.f32 %v3009_v13 }
 0x23a   :  { %v707_v12 = vmul.f32 %v2994_v3, %v706_v8  ;;  %2426 = vrsqrt.f32 %v2998_v5  ;;  %vm661_vm5 = vweird.f32 %v2998_v5  ;;  %vm651_vm8 = vweird.f32 %v2978_v54 }
 0x23b   :  { %v647_v48 = vmul.f32 %v3009_v13, %v646_v25 }
 0x23c   :  { %v708_v17 = vmul.f32 0.5, %v707_v12  ;;  %v636_v12 = vmul.f32 %v3011_v11, %v2987_v59 }
 0x23e   :  { %v540_v26 = vpop.xlane.xlu0 %539  ;;  %v526_v27 = vpop.xlane.xlu2 %525  ;;  %v709_v57 = vsub.f32 1.5, %v708_v17 }
 0x23f   :  { %v2425_v31 = vpop.eup %2424  ;;  %v3015_v38 = vadd.f32 1.0, %v540_v26  ;;  %v3017_v43 = vadd.f32 1.0, %v526_v27  ;;  %v520_v10 = vpop.xlane.xlu1 %519  ;;  %v700_v26 = vmul.f32 %v2981_v55, %v699_v7  ;;  %v648_v27 = vmul.f32 0.5, %v647_v48 }
 0x240   :  { %v3019_v45 = vpop.eup %2426  ;;  %v716_v0 = vmul.f32 %v2425_v31, %v2996_v4  ;;  %v710_v15 = vmul.f32 %v2994_v3, %v709_v57  ;;  %v3042_v19 = vadd.f32 1.0, %v520_v10  ;;  %vm722_vm10 = vweird.f32 %v2425_v31 }
 0x241   :  { %v656_v1 = vmul.f32 %v3019_v45, %v2998_v5  ;;  %2428 = vrsqrt.f32 %v3015_v38  ;;  %v670_v4 = vmul.f32 %v2974_v53, %v669_v50  ;;  %vm723_vm15 = vmor %vm721_vm12, %vm722_vm10  ;;  %v3079_v47 = vsel %vm703_vm13, %v2981_v55, %v700_v26 }
 0x242   :  { %v717_v8 = vmul.f32 %v2425_v31, %v716_v0  ;;  %2430 = vrsqrt.f32 %v3017_v43  ;;  %v3062_v46 = vsel %vm713_vm11, %v2994_v3, %v710_v15  ;;  %vm662_vm3 = vweird.f32 %v3019_v45 }
 0x243   :  { %v657_v63 = vmul.f32 %v3019_v45, %v656_v1  ;;  %2432 = vrsqrt.f32 %v3025_v2  ;;  %v637_v1 = vmul.f32 %v3011_v11, %v636_v12  ;;  %v3074_v12 = vsel %vm3048_vm9, %v2976_v20, %v690_v9  ;;  %vm663_vm7 = vmor %vm661_vm5, %vm662_vm3 }
 0x244   :  { %v718_v17 = vmul.f32 0.5, %v717_v8  ;;  %2434 = vrsqrt.f32 %v3042_v19  ;;  %v3087_v25 = vmul.f32 %v1097_v58, %v3062_v46  ;;  %v3103_v58 = vmul.f32 %v2990_v61, %v3079_v47  ;;  %vm653_vm9 = vmor %vm651_vm8, %vm652_vm1 }
 0x245   :  { %v658_v8 = vmul.f32 0.5, %v657_v63  ;;  %v1099_v63 = vpop.f32.mrf.mxu2  ;;  %v638_v55 = vmul.f32 0.5, %v637_v1  ;;  %vm681_vm4 = vweird.f32 %v3015_v38  ;;  %vm642_vm10 = vweird.f32 %v3011_v11 }
 0x246   :  { %v719_v51 = vsub.f32 1.5, %v718_v17  ;;  %v530_v57 = vpop.xlane.xlu0 %529  ;;  %v524_v0 = vpop.xlane.xlu2 %523  ;;  %vm641_vm11 = vweird.f32 %v2987_v59  ;;  %vm611_vm1 = vweird.f32 %v3017_v43 }
 0x247   :  { %v2429_v52 = vpop.eup %2428  ;;  %v3055_v10 = vadd.f32 1.0, %v530_v57  ;;  %v3065_v17 = vadd.f32 1.0, %v524_v0  ;;  %v659_v20 = vsub.f32 1.5, %v658_v8  ;;  %v3098_v57 = vsel %vm673_vm0, %v2974_v53, %v670_v4  ;;  %vm643_vm12 = vmor %vm641_vm11, %vm642_vm10 }
 0x248   :  { %v720_v7 = vmul.f32 %v2425_v31, %v719_v51  ;;  %v676_v48 = vmul.f32 %v2429_v52, %v3015_v38  ;;  %v3067_v29 = vpop.eup %2430  ;;  %v649_v51 = vsub.f32 1.5, %v648_v27  ;;  %v3109_v27 = vmul.f32 %v2969_v49, %v3074_v12 }
 0x249   :  { %2436 = vrsqrt.f32 %v3055_v10  ;;  %v3084_v50 = vpop.eup %2432  ;;  %v606_v26 = vmul.f32 %v3067_v29, %v3017_v43  ;;  %vm682_vm2 = vweird.f32 %v2429_v52  ;;  %v660_v61 = vmul.f32 %v3019_v45, %v659_v20 }
 0x24a   :  { %v3081_v3 = vsel %vm723_vm15, %v2425_v31, %v720_v7  ;;  %v677_v15 = vmul.f32 %v2429_v52, %v676_v48  ;;  %2438 = vrsqrt.f32 %v3065_v17  ;;  %v586_v0 = vmul.f32 %v3084_v50, %v3025_v2  ;;  %v3113_v8 = vpop.eup %2434  ;;  %vm683_vm6 = vmor %vm681_vm4, %vm682_vm2 }
 0x24b   :  { %v3090_v9 = vmul.f32 %v1099_v63, %v3081_v3  ;;  %v650_v7 = vmul.f32 %v3009_v13, %v649_v51  ;;  %v639_v49 = vsub.f32 1.5, %v638_v55  ;;  %v1124_v51 = vpack.c.bf16 %v3103_v58, %v3109_v27 }
 0x24c   :  { %v678_v31 = vmul.f32 0.5, %v677_v15  ;;  %v607_v15 = vmul.f32 %v3067_v29, %v606_v26  ;;  %v3131_v55 = vmul.f32 %v2957_v40, %v3098_v57  ;;  %v587_v38 = vmul.f32 %v3084_v50, %v586_v0 }
 0x24d   :  { %v1125_v42 = vpack.c.bf16 %v3090_v9, %v3087_v25  ;;  %v576_v26 = vmul.f32 %v3113_v8, %v3042_v19  ;;  %v640_v0 = vmul.f32 %v3011_v11, %v639_v49  ;;  %v3155_v54 = vsel %vm653_vm9, %v3009_v13, %v650_v7 }
 0x24e   :  { %v679_v1 = vsub.f32 1.5, %v678_v31  ;;  %v528_v53 = vpop.xlane.xlu0 %527  ;;  %vm631_vm14 = vweird.f32 %v3055_v10  ;;  %vm612_vm0 = vweird.f32 %v3067_v29  ;;  %vm592_vm4 = vweird.f32 %v3084_v50 }
 0x24f   :  { %v3118_v48 = vadd.f32 1.0, %v528_v53  ;;  %1126 = vmatpush.bf16.msrb.mxu0 %v1125_v42  ;;  %v2437_v4 = vpop.eup %2436  ;;  %v3142_v42 = vsel %vm663_vm7, %v3019_v45, %v660_v61  ;;  %vm613_vm5 = vmor %vm611_vm1, %vm612_vm0  ;;  %vm591_vm9 = vweird.f32 %v3025_v2 }
 0x250   :  { %v680_v63 = vmul.f32 %v2429_v52, %v679_v1  ;;  %v626_v31 = vmul.f32 %v2437_v4, %v3055_v10  ;;  %v3127_v20 = vpop.eup %2438  ;;  %vm632_vm13 = vweird.f32 %v2437_v4  ;;  %vm593_vm11 = vmor %vm591_vm9, %vm592_vm4 }
 0x251   :  { %2440 = vrsqrt.f32 %v3118_v48  ;;  %v596_v40 = vmul.f32 %v3127_v20, %v3065_v17  ;;  %vm633_vm15 = vmor %vm631_vm14, %vm632_vm13  ;;  %vm602_vm2 = vweird.f32 %v3127_v20  ;;  %vm621_vm8 = vweird.f32 %v3118_v48 }
 0x252   :  { %v3136_v5 = vsel %vm683_vm6, %v2429_v52, %v680_v63  ;;  %v627_v1 = vmul.f32 %v2437_v4, %v626_v31  ;;  %v608_v52 = vmul.f32 0.5, %v607_v15  ;;  %v588_v63 = vmul.f32 0.5, %v587_v38 }
 0x253   :  { %1127 = vmatpush.bf16.msrb.mxu0 %v1124_v51  ;;  %v3152_v53 = vmul.f32 %v2959_v41, %v3136_v5  ;;  %v597_v61 = vmul.f32 %v3127_v20, %v596_v40  ;;  %v577_v31 = vmul.f32 %v3113_v8, %v576_v26  ;;  %v3164_v15 = vmul.f32 %v2955_v39, %v3142_v42 }
 0x254   :  { %v628_v45 = vmul.f32 0.5, %v627_v1  ;;  %v3169_v1 = vsel %vm643_vm12, %v3011_v11, %v640_v0  ;;  %v609_v38 = vsub.f32 1.5, %v608_v52  ;;  %v3174_v40 = vmul.f32 %v2953_v37, %v3155_v54 }
 0x255   :  { %v1123_v49 = vpack.c.bf16 %v3152_v53, %v3131_v55  ;;  %v598_v7 = vmul.f32 0.5, %v597_v61  ;;  %v589_v0 = vsub.f32 1.5, %v588_v63  ;;  %v578_v52 = vmul.f32 0.5, %v577_v31 }
 0x256   :  { %v518_v51 = vpop.xlane.xlu0 %517  ;;  %v629_v13 = vsub.f32 1.5, %v628_v45  ;;  %v1122_v11 = vpack.c.bf16 %v3164_v15, %v3174_v40  ;;  %v610_v37 = vmul.f32 %v3067_v29, %v609_v38  ;;  %vm601_vm6 = vweird.f32 %v3065_v17 }
 0x257   :  { %v2441_v41 = vpop.eup %2440  ;;  %v3166_v59 = vadd.f32 1.0, %v518_v51  ;;  %1128 = vmatpush.bf16.msrb.mxu0 %v1123_v49  ;;  %v599_v45 = vsub.f32 1.5, %v598_v7  ;;  %v3184_v49 = vmul.f32 %v2951_v28, %v3169_v1  ;;  %v590_v7 = vmul.f32 %v3084_v50, %v589_v0  ;;  %vm603_vm7 = vmor %vm601_vm6, %vm602_vm2 }
 0x258   :  { %v616_v26 = vmul.f32 %v2441_v41, %v3118_v48  ;;  %v630_v39 = vmul.f32 %v2437_v4, %v629_v13  ;;  %vm622_vm3 = vweird.f32 %v2441_v41  ;;  %v579_v38 = vsub.f32 1.5, %v578_v52 }
 0x259   :  { %2442 = vrsqrt.f32 %v3166_v59  ;;  %vm623_vm10 = vmor %vm621_vm8, %vm622_vm3  ;;  %vm582_vm12 = vweird.f32 %v3113_v8  ;;  %vm581_vm13 = vweird.f32 %v3042_v19  ;;  %vm571_vm0 = vweird.f32 %v3166_v59 }
 0x25a   :  { %v617_v61 = vmul.f32 %v2441_v41, %v616_v26  ;;  %v3180_v51 = vsel %vm633_vm15, %v2437_v4, %v630_v39  ;;  %v600_v4 = vmul.f32 %v3127_v20, %v599_v45  ;;  %v580_v2 = vmul.f32 %v3113_v8, %v579_v38  ;;  %vm583_vm15 = vmor %vm581_vm13, %vm582_vm12 }
 0x25b   :  { %1129 = vmatpush.bf16.msrb.mxu0 %v1122_v11  ;;  %v3190_v13 = vmul.f32 %v2949_v21, %v3180_v51  ;;  %v3201_v21 = vsel %vm613_vm5, %v3067_v29, %v610_v37  ;;  %vm1908_vm2 = vcmask 523264  }
 0x25c   :  { %v618_v10 = vmul.f32 0.5, %v617_v61  ;;  %v3208_v39 = vsel %vm603_vm7, %v3127_v20, %v600_v4  ;;  %v3214_v29 = vmul.f32 %v2944_v6, %v3201_v21  ;;  %v3221_v61 = vsel %vm593_vm11, %v3084_v50, %v590_v7 }
 0x25d   :  { %v1121_v28 = vpack.c.bf16 %v3184_v49, %v3190_v13  ;;  %v3229_v11 = vmul.f32 %v2935_v35, %v3208_v39  ;;  %v3235_v50 = vsel %vm583_vm15, %v3113_v8, %v580_v2  ;;  %v3252_v8 = vpack.c.bf16 %v2933_v33, %v2887_v24  ;;  %v2378_v24 = vld [vmem:[%s3686_s7 + $0x70] sm:$0xff]  ;;  %v2373_v33 = vld [vmem:[%s3686_s7 + $0x48] sm:$0xff] }
 0x25e   :  { %v619_v63 = vsub.f32 1.5, %v618_v10  ;;  %v1103_v37 = vmul.f32 %v2918_v23, %v3235_v50  ;;  %v3262_v23 = vpack.c.bf16 %v2915_v22, %v2901_v44  ;;  %v2376_v44 = vld [vmem:[%s3686_s7 + $0x60] sm:$0xff]  ;;  %v2375_v22 = vld [vmem:[%s3686_s7 + $0x58] sm:$0xff] }
 0x25f   :  { %v2443_v31 = vpop.eup %2442  ;;  %1130 = vmatpush.bf16.msrb.mxu0 %v1121_v28 }
 0x260   :  { %v620_v43 = vmul.f32 %v2441_v41, %v619_v63  ;;  %v566_v26 = vmul.f32 %v2443_v31, %v3166_v59  ;;  %vm572_vm14 = vweird.f32 %v2443_v31  ;;  %v3697_v59 = vld [vmem:[#allocation2_spill] sm:$0xff] }
 0x261   :  { %vm573_vm1 = vmor %vm571_vm0, %vm572_vm14 }
 0x262   :  { %v3210_v45 = vsel %vm623_vm10, %v2441_v41, %v620_v43  ;;  %v567_v17 = vmul.f32 %v2443_v31, %v566_v26 }
 0x263   :  { %v3218_v48 = vmul.f32 %v2947_v18, %v3210_v45  ;;  %v1104_v18 = vmul.f32 %v2923_v30, %v3221_v61  ;;  %v3247_v30 = vpack.c.bf16 %v2927_v32, %v2879_v14  ;;  %v2379_v14 = vld [vmem:[%s3686_s7 + $0x78] sm:$0xff]  ;;  %v2374_v32 = vld [vmem:[%s3686_s7 + $0x50] sm:$0xff] }
 0x264   :  { %v568_v20 = vmul.f32 0.5, %v567_v17  ;;  %1300 = vmatpush.bf16.msrb.mxu1 %v2379_v14 }
 0x265   :  { %v1120_v41 = vpack.c.bf16 %v3218_v48, %v3214_v29  ;;  %v1119_v52 = vpack.c.bf16 %v3229_v11, %v1104_v18 }
 0x266   :  { %v569_v6 = vsub.f32 1.5, %v568_v20 }
 0x267   :  { %1131 = vmatpush.bf16.msrb.mxu0 %v1120_v41 }
 0x268   :  { %v570_v0 = vmul.f32 %v2443_v31, %v569_v6  ;;  %1301 = vmatpush.bf16.msrb.mxu1 %v2378_v24 }
 0x26a   :  { %v3239_v35 = vsel %vm573_vm1, %v2443_v31, %v570_v0  ;;  %v3297_v31 = vld [vmem:[%s3687_s8] ss:$0 sm:$0xff] }
 0x26b   :  { %1132 = vmatpush.bf16.msrb.mxu0 %v1119_v52  ;;  %v1102_v19 = vmul.f32 %v2913_v60, %v3239_v35  ;;  %v3257_v60 = vpack.c.bf16 %v2941_v36, %v2895_v34  ;;  %v2377_v34 = vld [vmem:[%s3686_s7 + $0x68] sm:$0xff]  ;;  %v2372_v36 = vld [vmem:[%s3686_s7 + $0x40] sm:$0xff] }
 0x26c   :  { %1302 = vmatpush.bf16.msrb.mxu1 %v2377_v34 }
 0x26d   :  { %v1118_v10 = vpack.c.bf16 %v1103_v37, %v1102_v19 }
 0x26f   :  { %1133 = vmatpush.bf16.msrb.mxu0 %v1118_v10 }
 0x270   :  { %1303 = vmatpush.bf16.msrb.mxu1 %v2376_v44 }
 0x272   :  { %1134 = vmatmul.bf16.vlgmr.msrb.gmra.mxu0 %v3247_v30 }
 0x274   :  { %1304 = vmatpush.bf16.msrb.mxu1 %v2375_v22 }
 0x278   :  { %1305 = vmatpush.bf16.msrb.mxu1 %v2374_v32 }
 0x27c   :  { %1306 = vmatpush.bf16.msrb.mxu1 %v2373_v33 }
 0x280   :  { %1307 = vmatpush.bf16.msrb.mxu1 %v2372_v36 }
 0x282   :  { %1139 = vmatmul.bf16.gmra.mxu0 %v3252_v8 }
 0x292   :  { %1144 = vmatmul.bf16.gmra.mxu0 %v3257_v60 }
 0x2a2   :  { %1149 = vmatmul.bf16.gmra.mxu0 %v3262_v23 }
 0x2b2   :  { %1154 = vmatmul.bf16.gmra.mxu0 %v2905_v62 }
 0x2c2   :  { %1159 = vmatmul.bf16.gmra.mxu0 %v2909_v56 }
 0x2d2   :  { %1164 = vmatmul.bf16.gmra.mxu0 %v2911_v16 }
 0x2e2   :  { %1169 = vmatmul.bf16.gmra.mxu0 %v3697_v59 }
 0x2ef   :  { %v1135_v4 = vpop.f32.mrf.mxu0 }
 0x2f0   :  { %v1136_v63 = vadd.f32 %v1135_v4, %v1102_v19 }
 0x2f2   :  { %v1175_v28 = vmul.f32 %v1136_v63, %v3239_v35 }
 0x2f4   :  { %v1195_v43 = vadd.f32 %v3297_v31, %v1175_v28 }
 0x2f6   :  { %v1211_v2 = vmax.f32 %v1195_v43, 0.0 }
 0x2f7   :  { %v1137_v7 = vpop.f32.mrf.mxu0 }
 0x2f8   :  { %v1138_v38 = vadd.f32 %v1137_v7, %v1103_v37 }
 0x2fa   :  { %v1176_v26 = vmul.f32 %v1138_v38, %v3235_v50 }
 0x2fc   :  { %v1196_v17 = vadd.f32 %v3297_v31, %v1176_v26 }
 0x2fe   :  { %v1212_v20 = vmax.f32 %v1196_v17, 0.0 }
 0x2ff   :  { %v1140_v41 = vpop.f32.mrf.mxu0 }
 0x300   :  { %v1227_v6 = vpack.c.bf16 %v1212_v20, %v1211_v2  ;;  %v1141_v0 = vadd.f32 %v1140_v41, %v1104_v18 }
 0x302   :  { %1308 = vmatmul.bf16.vlgmr.msrb.gmra.mxu1 %v1227_v6  ;;  %v1177_v52 = vmul.f32 %v1141_v0, %v3221_v61 }
 0x304   :  { %v1197_v37 = vadd.f32 %v3297_v31, %v1177_v52 }
 0x306   :  { %v1213_v34 = vmax.f32 %v1197_v37, 0.0 }
 0x307   :  { %v1142_v19 = vpop.f32.mrf.mxu0 }
 0x308   :  { %v1143_v10 = vadd.f32 %v1142_v19, %v3229_v11 }
 0x30a   :  { %v1178_v14 = vmul.f32 %v1143_v10, %v3208_v39 }
 0x30c   :  { %v1198_v24 = vadd.f32 %v3297_v31, %v1178_v14 }
 0x30e   :  { %v1214_v44 = vmax.f32 %v1198_v24, 0.0 }
 0x30f   :  { %v1145_v22 = vpop.f32.mrf.mxu0 }
 0x310   :  { %v1228_v32 = vpack.c.bf16 %v1214_v44, %v1213_v34  ;;  %v1146_v33 = vadd.f32 %v1145_v22, %v3214_v29 }
 0x312   :  { %1313 = vmatmul.bf16.gmra.mxu1 %v1228_v32  ;;  %v1179_v18 = vmul.f32 %v1146_v33, %v3201_v21 }
 0x314   :  { %v1199_v63 = vadd.f32 %v3297_v31, %v1179_v18 }
 0x316   :  { %v1215_v7 = vmax.f32 %v1199_v63, 0.0 }
 0x317   :  { %v1147_v36 = vpop.f32.mrf.mxu0 }
 0x318   :  { %v1148_v4 = vadd.f32 %v1147_v36, %v3218_v48 }
 0x31a   :  { %v1180_v11 = vmul.f32 %v1148_v4, %v3210_v45 }
 0x31c   :  { %v1200_v28 = vadd.f32 %v3297_v31, %v1180_v11 }
 0x31e   :  { %v1216_v38 = vmax.f32 %v1200_v28, 0.0 }
 0x31f   :  { %v1150_v43 = vpop.f32.mrf.mxu0 }
 0x320   :  { %v1229_v26 = vpack.c.bf16 %v1216_v38, %v1215_v7  ;;  %v1151_v17 = vadd.f32 %v1150_v43, %v3190_v13 }
 0x322   :  { %1318 = vmatmul.bf16.gmra.mxu1 %v1229_v26  ;;  %v1181_v29 = vmul.f32 %v1151_v17, %v3180_v51 }
 0x324   :  { %v1201_v41 = vadd.f32 %v3297_v31, %v1181_v29 }
 0x326   :  { %v1217_v0 = vmax.f32 %v1201_v41, 0.0 }
 0x327   :  { %v1152_v2 = vpop.f32.mrf.mxu0 }
 0x328   :  { %v1153_v20 = vadd.f32 %v1152_v2, %v3184_v49 }
 0x32a   :  { %v1182_v48 = vmul.f32 %v1153_v20, %v3169_v1 }
 0x32c   :  { %v1202_v6 = vadd.f32 %v3297_v31, %v1182_v48 }
 0x32e   :  { %v1218_v52 = vmax.f32 %v1202_v6, 0.0 }
 0x32f   :  { %v1155_v19 = vpop.f32.mrf.mxu0 }
 0x330   :  { %v1230_v10 = vpack.c.bf16 %v1218_v52, %v1217_v0  ;;  %v1156_v14 = vadd.f32 %v1155_v19, %v3174_v40 }
 0x332   :  { %1323 = vmatmul.bf16.gmra.mxu1 %v1230_v10  ;;  %v1183_v13 = vmul.f32 %v1156_v14, %v3155_v54 }
 0x334   :  { %v1203_v49 = vadd.f32 %v3297_v31, %v1183_v13 }
 0x336   :  { %v1219_v22 = vmax.f32 %v1203_v49, 0.0 }
 0x337   :  { %v1157_v37 = vpop.f32.mrf.mxu0 }
 0x338   :  { %v1158_v24 = vadd.f32 %v1157_v37, %v3164_v15 }
 0x33a   :  { %v1184_v34 = vmul.f32 %v1158_v24, %v3142_v42 }
 0x33c   :  { %v1204_v44 = vadd.f32 %v3297_v31, %v1184_v34 }
 0x33e   :  { %v1220_v32 = vmax.f32 %v1204_v44, 0.0 }
 0x33f   :  { %v1160_v33 = vpop.f32.mrf.mxu0 }
 0x340   :  { %v1231_v18 = vpack.c.bf16 %v1220_v32, %v1219_v22  ;;  %v1161_v36 = vadd.f32 %v1160_v33, %v3131_v55 }
 0x342   :  { %1328 = vmatmul.bf16.gmra.mxu1 %v1231_v18  ;;  %v1185_v40 = vmul.f32 %v1161_v36, %v3098_v57 }
 0x344   :  { %v1205_v15 = vadd.f32 %v3297_v31, %v1185_v40 }
 0x346   :  { %v1221_v7 = vmax.f32 %v1205_v15, 0.0 }
 0x347   :  { %v1162_v4 = vpop.f32.mrf.mxu0 }
 0x348   :  { %v1163_v11 = vadd.f32 %v1162_v4, %v3152_v53 }
 0x34a   :  { %v1186_v63 = vmul.f32 %v1163_v11, %v3136_v5 }
 0x34c   :  { %v1206_v28 = vadd.f32 %v3297_v31, %v1186_v63 }
 0x34e   :  { %v1222_v38 = vmax.f32 %v1206_v28, 0.0 }
 0x34f   :  { %v1165_v43 = vpop.f32.mrf.mxu0 }
 0x350   :  { %v1232_v26 = vpack.c.bf16 %v1222_v38, %v1221_v7  ;;  %v1166_v17 = vadd.f32 %v1165_v43, %v3109_v27 }
 0x352   :  { %1333 = vmatmul.bf16.gmra.mxu1 %v1232_v26  ;;  %v1187_v55 = vmul.f32 %v1166_v17, %v3074_v12 }
 0x354   :  { %v1207_v53 = vadd.f32 %v3297_v31, %v1187_v55 }
 0x356   :  { %v1223_v41 = vmax.f32 %v1207_v53, 0.0 }
 0x357   :  { %v1167_v29 = vpop.f32.mrf.mxu0 }
 0x358   :  { %v1168_v2 = vadd.f32 %v1167_v29, %v3103_v58 }
 0x35a   :  { %v1188_v20 = vmul.f32 %v1168_v2, %v3079_v47 }
 0x35c   :  { %v1208_v48 = vadd.f32 %v3297_v31, %v1188_v20 }
 0x35e   :  { %v1224_v6 = vmax.f32 %v1208_v48, 0.0 }
 0x35f   :  { %v1170_v0 = vpop.f32.mrf.mxu0 }
 0x360   :  { %v1233_v52 = vpack.c.bf16 %v1224_v6, %v1223_v41  ;;  %v1171_v19 = vadd.f32 %v1170_v0, %v3087_v25 }
 0x362   :  { %1338 = vmatmul.bf16.gmra.mxu1 %v1233_v52  ;;  %v1189_v27 = vmul.f32 %v1171_v19, %v3062_v46 }
 0x364   :  { %v1209_v58 = vadd.f32 %v3297_v31, %v1189_v27 }
 0x366   :  { %v1225_v24 = vmax.f32 %v1209_v58, 0.0 }
 0x367   :  { %v1172_v10 = vpop.f32.mrf.mxu0 }
 0x368   :  { %v1173_v14 = vadd.f32 %v1172_v10, %v3090_v9 }
 0x36a   :  { %v1190_v13 = vmul.f32 %v1173_v14, %v3081_v3 }
 0x36c   :  { %v1210_v37 = vadd.f32 %v3297_v31, %v1190_v13 }
 0x36e   :  { %v1226_v49 = vmax.f32 %v1210_v37, 0.0 }
 0x370   :  { %v1234_v34 = vpack.c.bf16 %v1226_v49, %v1225_v24 }
 0x372   :  { %1343 = vmatmul.bf16.gmra.mxu1 %v1234_v34 }
 0x37f   :  { %v1309_v44 = vpop.f32.mrf.mxu1 }
 0x380   :  { %v1349_v49 = vmul.f32 %v1309_v44, %v3239_v35  ;;  %v2386_v44 = vld [vmem:[%s3686_s7 + $0xb0] sm:$0xff] }
 0x387   :  { %v1311_v22 = vpop.f32.mrf.mxu1 }
 0x388   :  { %v1350_v37 = vmul.f32 %v1311_v22, %v3235_v50  ;;  %v2387_v22 = vld [vmem:[%s3686_s7 + $0xb8] sm:$0xff] }
 0x389   :  { %1548 = vmatpush.bf16.msra.mxu2 %v2387_v22 }
 0x38a   :  { %v1365_v34 = vpack.c.bf16 %v1350_v37, %v1349_v49 }
 0x38d   :  { %1549 = vmatpush.bf16.msra.mxu2 %v2386_v44 }
 0x38f   :  { %v1314_v32 = vpop.f32.mrf.mxu1 }
 0x390   :  { %v1351_v13 = vmul.f32 %v1314_v32, %v3221_v61  ;;  %v2385_v32 = vld [vmem:[%s3686_s7 + $0xa8] sm:$0xff] }
 0x391   :  { %1550 = vmatpush.bf16.msra.mxu2 %v2385_v32 }
 0x397   :  { %v1316_v25 = vpop.f32.mrf.mxu1 }
 0x398   :  { %v1352_v14 = vmul.f32 %v1316_v25, %v3208_v39  ;;  %v2384_v25 = vld [vmem:[%s3686_s7 + $0xa0] sm:$0xff] }
 0x399   :  { %1551 = vmatpush.bf16.msra.mxu2 %v2384_v25 }
 0x39a   :  { %v1366_v24 = vpack.c.bf16 %v1352_v14, %v1351_v13 }
 0x39f   :  { %v1319_v33 = vpop.f32.mrf.mxu1 }
 0x3a0   :  { %v1353_v10 = vmul.f32 %v1319_v33, %v3201_v21  ;;  %v2383_v33 = vld [vmem:[%s3686_s7 + $0x98] sm:$0xff] }
 0x3a1   :  { %1552 = vmatpush.bf16.msra.mxu2 %v2383_v33 }
 0x3a7   :  { %v1321_v18 = vpop.f32.mrf.mxu1 }
 0x3a8   :  { %v3382_v19 = vmul.f32 %v1321_v18, %v3210_v45  ;;  %v2382_v18 = vld [vmem:[%s3686_s7 + $0x90] sm:$0xff] }
 0x3a9   :  { %1553 = vmatpush.bf16.msra.mxu2 %v2382_v18 }
 0x3aa   :  { %v1367_v58 = vpack.c.bf16 %v3382_v19, %v1353_v10 }
 0x3af   :  { %v1324_v36 = vpop.f32.mrf.mxu1 }
 0x3b0   :  { %v3379_v52 = vmul.f32 %v1324_v36, %v3180_v51  ;;  %v2381_v36 = vld [vmem:[%s3686_s7 + $0x88] sm:$0xff] }
 0x3b1   :  { %1554 = vmatpush.bf16.msra.mxu2 %v2381_v36 }
 0x3b7   :  { %v1326_v40 = vpop.f32.mrf.mxu1 }
 0x3b8   :  { %v3374_v6 = vmul.f32 %v1326_v40, %v3169_v1  ;;  %v2380_v40 = vld [vmem:[%s3686_s7 + $0x80] sm:$0xff] }
 0x3b9   :  { %1555 = vmatpush.bf16.msra.mxu2 %v2380_v40 }
 0x3ba   :  { %v1368_v27 = vpack.c.bf16 %v3374_v6, %v3379_v52 }
 0x3bf   :  { %v1329_v4 = vpop.f32.mrf.mxu1 }
 0x3c0   :  { %v3371_v41 = vmul.f32 %v1329_v4, %v3155_v54 }
 0x3c7   :  { %v1331_v9 = vpop.f32.mrf.mxu1 }
 0x3c8   :  { %v3366_v20 = vmul.f32 %v1331_v9, %v3142_v42 }
 0x3ca   :  { %v1369_v0 = vpack.c.bf16 %v3366_v20, %v3371_v41 }
 0x3cf   :  { %v1334_v11 = vpop.f32.mrf.mxu1 }
 0x3d0   :  { %v3363_v53 = vmul.f32 %v1334_v11, %v3098_v57 }
 0x3d7   :  { %v1336_v15 = vpop.f32.mrf.mxu1 }
 0x3d8   :  { %v3358_v29 = vmul.f32 %v1336_v15, %v3136_v5  ;;  %v3428_v15 = vld [vmem:[%s3687_s8 + $0x1] ss:$0 sm:$0xff] }
 0x3da   :  { %v1370_v48 = vpack.c.bf16 %v3358_v29, %v3363_v53 }
 0x3df   :  { %v1339_v63 = vpop.f32.mrf.mxu1 }
 0x3e0   :  { %v3355_v55 = vmul.f32 %v1339_v63, %v3074_v12 }
 0x3e7   :  { %v1341_v28 = vpop.f32.mrf.mxu1 }
 0x3e8   :  { %v3350_v26 = vmul.f32 %v1341_v28, %v3079_v47 }
 0x3ea   :  { %v1371_v2 = vpack.c.bf16 %v3350_v26, %v3355_v55 }
 0x3ef   :  { %v1344_v7 = vpop.f32.mrf.mxu1 }
 0x3f0   :  { %v3344_v38 = vmul.f32 %v1344_v7, %v3062_v46 }
 0x3f7   :  { %v1346_v31 = vpop.f32.mrf.mxu1 }
 0x3f8   :  { %v3347_v43 = vmul.f32 %v1346_v31, %v3081_v3 }
 0x3fa   :  { %v1372_v17 = vpack.c.bf16 %v3347_v43, %v3344_v38 }
 0x3fc   :  { %1373 = vmatpush.bf16.msrb.mxu3 %v1372_v17 }
 0x400   :  { %1374 = vmatpush.bf16.msrb.mxu3 %v1371_v2 }
 0x404   :  { %1375 = vmatpush.bf16.msrb.mxu3 %v1370_v48 }
 0x408   :  { %1376 = vmatpush.bf16.msrb.mxu3 %v1369_v0 }
 0x40c   :  { %1377 = vmatpush.bf16.msrb.mxu3 %v1368_v27 }
 0x410   :  { %1378 = vmatpush.bf16.msrb.mxu3 %v1367_v58 }
 0x414   :  { %1379 = vmatpush.bf16.msrb.mxu3 %v1366_v24 }
 0x418   :  { %1380 = vmatpush.bf16.msrb.mxu3 %v1365_v34 }
 0x41b   :  { %1381 = vmatmul.bf16.vlgmr.msrb.gmra.mxu3 %v3247_v30 }
 0x42b   :  { %1386 = vmatmul.bf16.gmra.mxu3 %v3252_v8 }
 0x43b   :  { %1391 = vmatmul.bf16.gmra.mxu3 %v3257_v60 }
 0x44b   :  { %1396 = vmatmul.bf16.gmra.mxu3 %v3262_v23 }
 0x45b   :  { %1401 = vmatmul.bf16.gmra.mxu3 %v2905_v62 }
 0x46b   :  { %1406 = vmatmul.bf16.gmra.mxu3 %v2909_v56 }
 0x47b   :  { %1411 = vmatmul.bf16.gmra.mxu3 %v2911_v16 }
 0x48b   :  { %1416 = vmatmul.bf16.gmra.mxu3 %v3697_v59 }
 0x49e   :  { %v1382_v4 = vpop.f32.mrf.mxu3 }
 0x49f   :  { %v1383_v9 = vadd.f32 %v1382_v4, %v1349_v49 }
 0x4a1   :  { %v1422_v11 = vmul.f32 %v1383_v9, %v3239_v35 }
 0x4a3   :  { %v1443_v7 = vadd.f32 %v3428_v15, %v1422_v11 }
 0x4a5   :  { %v1459_v2 = vmax.f32 %v1443_v7, 0.0 }
 0x4a6   :  { %v1384_v63 = vpop.f32.mrf.mxu3 }
 0x4a7   :  { %v1385_v28 = vadd.f32 %v1384_v63, %v1350_v37 }
 0x4a9   :  { %v1423_v31 = vmul.f32 %v1385_v28, %v3235_v50 }
 0x4ab   :  { %v1444_v17 = vadd.f32 %v3428_v15, %v1423_v31 }
 0x4ad   :  { %v1460_v48 = vmax.f32 %v1444_v17, 0.0 }
 0x4ae   :  { %v1387_v0 = vpop.f32.mrf.mxu3 }
 0x4af   :  { %v1475_v27 = vpack.c.bf16 %v1460_v48, %v1459_v2  ;;  %v1388_v58 = vadd.f32 %v1387_v0, %v1351_v13 }
 0x4b1   :  { %1556 = vmatmul.bf16.vlgmr.msra.gmra.mxu2 %v1475_v27  ;;  %v1424_v24 = vmul.f32 %v1388_v58, %v3221_v61 }
 0x4b3   :  { %v1445_v22 = vadd.f32 %v3428_v15, %v1424_v24 }
 0x4b5   :  { %v1461_v32 = vmax.f32 %v1445_v22, 0.0 }
 0x4b6   :  { %v1389_v49 = vpop.f32.mrf.mxu3 }
 0x4b7   :  { %v1390_v34 = vadd.f32 %v1389_v49, %v1352_v14 }
 0x4b9   :  { %v1425_v37 = vmul.f32 %v1390_v34, %v3208_v39 }
 0x4bb   :  { %v1446_v44 = vadd.f32 %v3428_v15, %v1425_v37 }
 0x4bd   :  { %v1462_v25 = vmax.f32 %v1446_v44, 0.0 }
 0x4be   :  { %v1392_v33 = vpop.f32.mrf.mxu3 }
 0x4bf   :  { %v1476_v18 = vpack.c.bf16 %v1462_v25, %v1461_v32  ;;  %v1393_v36 = vadd.f32 %v1392_v33, %v1353_v10 }
 0x4c1   :  { %1561 = vmatmul.bf16.gmra.mxu2 %v1476_v18  ;;  %v1426_v40 = vmul.f32 %v1393_v36, %v3201_v21 }
 0x4c3   :  { %v1447_v9 = vadd.f32 %v3428_v15, %v1426_v40 }
 0x4c5   :  { %v1463_v63 = vmax.f32 %v1447_v9, 0.0 }
 0x4c6   :  { %v1394_v13 = vpop.f32.mrf.mxu3 }
 0x4c7   :  { %v1395_v4 = vadd.f32 %v1394_v13, %v3382_v19 }
 0x4c9   :  { %v1427_v14 = vmul.f32 %v1395_v4, %v3210_v45 }
 0x4cb   :  { %v1448_v11 = vadd.f32 %v3428_v15, %v1427_v14 }
 0x4cd   :  { %v1464_v28 = vmax.f32 %v1448_v11, 0.0 }
 0x4ce   :  { %v1397_v7 = vpop.f32.mrf.mxu3 }
 0x4cf   :  { %v1477_v31 = vpack.c.bf16 %v1464_v28, %v1463_v63  ;;  %v1398_v17 = vadd.f32 %v1397_v7, %v3379_v52 }
 0x4d1   :  { %1566 = vmatmul.bf16.gmra.mxu2 %v1477_v31  ;;  %v1428_v10 = vmul.f32 %v1398_v17, %v3180_v51 }
 0x4d3   :  { %v1449_v19 = vadd.f32 %v3428_v15, %v1428_v10 }
 0x4d5   :  { %v1465_v58 = vmax.f32 %v1449_v19, 0.0 }
 0x4d6   :  { %v1399_v2 = vpop.f32.mrf.mxu3 }
 0x4d7   :  { %v1400_v48 = vadd.f32 %v1399_v2, %v3374_v6 }
 0x4d9   :  { %v1429_v0 = vmul.f32 %v1400_v48, %v3169_v1 }
 0x4db   :  { %v1450_v27 = vadd.f32 %v3428_v15, %v1429_v0 }
 0x4dd   :  { %v1466_v24 = vmax.f32 %v1450_v27, 0.0 }
 0x4de   :  { %v1402_v49 = vpop.f32.mrf.mxu3 }
 0x4df   :  { %v1478_v34 = vpack.c.bf16 %v1466_v24, %v1465_v58  ;;  %v1403_v22 = vadd.f32 %v1402_v49, %v3371_v41 }
 0x4e1   :  { %1571 = vmatmul.bf16.gmra.mxu2 %v1478_v34  ;;  %v1430_v52 = vmul.f32 %v1403_v22, %v3155_v54 }
 0x4e3   :  { %v1451_v6 = vadd.f32 %v3428_v15, %v1430_v52 }
 0x4e5   :  { %v1467_v33 = vmax.f32 %v1451_v6, 0.0 }
 0x4e6   :  { %v1404_v37 = vpop.f32.mrf.mxu3 }
 0x4e7   :  { %v1405_v44 = vadd.f32 %v1404_v37, %v3366_v20 }
 0x4e9   :  { %v1431_v32 = vmul.f32 %v1405_v44, %v3142_v42 }
 0x4eb   :  { %v1452_v25 = vadd.f32 %v3428_v15, %v1431_v32 }
 0x4ed   :  { %v1468_v18 = vmax.f32 %v1452_v25, 0.0 }
 0x4ee   :  { %v1407_v36 = vpop.f32.mrf.mxu3 }
 0x4ef   :  { %v1479_v40 = vpack.c.bf16 %v1468_v18, %v1467_v33  ;;  %v1408_v13 = vadd.f32 %v1407_v36, %v3363_v53 }
 0x4f1   :  { %1576 = vmatmul.bf16.gmra.mxu2 %v1479_v40  ;;  %v1432_v41 = vmul.f32 %v1408_v13, %v3098_v57 }
 0x4f3   :  { %v1453_v20 = vadd.f32 %v3428_v15, %v1432_v41 }
 0x4f5   :  { %v1469_v63 = vmax.f32 %v1453_v20, 0.0 }
 0x4f6   :  { %v1409_v4 = vpop.f32.mrf.mxu3 }
 0x4f7   :  { %v1410_v9 = vadd.f32 %v1409_v4, %v3358_v29 }
 0x4f9   :  { %v1433_v14 = vmul.f32 %v1410_v9, %v3136_v5 }
 0x4fb   :  { %v1454_v11 = vadd.f32 %v3428_v15, %v1433_v14 }
 0x4fd   :  { %v1470_v28 = vmax.f32 %v1454_v11, 0.0 }
 0x4fe   :  { %v1412_v7 = vpop.f32.mrf.mxu3 }
 0x4ff   :  { %v1480_v31 = vpack.c.bf16 %v1470_v28, %v1469_v63  ;;  %v1413_v17 = vadd.f32 %v1412_v7, %v3355_v55 }
 0x501   :  { %1581 = vmatmul.bf16.gmra.mxu2 %v1480_v31  ;;  %v1434_v53 = vmul.f32 %v1413_v17, %v3074_v12 }
 0x503   :  { %v1455_v29 = vadd.f32 %v3428_v15, %v1434_v53 }
 0x505   :  { %v1471_v0 = vmax.f32 %v1455_v29, 0.0 }
 0x506   :  { %v1414_v10 = vpop.f32.mrf.mxu3 }
 0x507   :  { %v1415_v2 = vadd.f32 %v1414_v10, %v3350_v26 }
 0x509   :  { %v1435_v48 = vmul.f32 %v1415_v2, %v3079_v47 }
 0x50b   :  { %v1456_v19 = vadd.f32 %v3428_v15, %v1435_v48 }
 0x50d   :  { %v1472_v27 = vmax.f32 %v1456_v19, 0.0 }
 0x50e   :  { %v1417_v58 = vpop.f32.mrf.mxu3 }
 0x50f   :  { %v1481_v24 = vpack.c.bf16 %v1472_v27, %v1471_v0  ;;  %v1418_v49 = vadd.f32 %v1417_v58, %v3344_v38 }
 0x511   :  { %1586 = vmatmul.bf16.gmra.mxu2 %v1481_v24  ;;  %v1436_v55 = vmul.f32 %v1418_v49, %v3062_v46 }
 0x513   :  { %v1457_v26 = vadd.f32 %v3428_v15, %v1436_v55 }
 0x515   :  { %v1473_v44 = vmax.f32 %v1457_v26, 0.0 }
 0x516   :  { %v1419_v34 = vpop.f32.mrf.mxu3 }
 0x517   :  { %v1420_v22 = vadd.f32 %v1419_v34, %v3347_v43 }
 0x519   :  { %v1437_v52 = vmul.f32 %v1420_v22, %v3081_v3 }
 0x51b   :  { %v1458_v37 = vadd.f32 %v3428_v15, %v1437_v52 }
 0x51d   :  { %v1474_v6 = vmax.f32 %v1458_v37, 0.0 }
 0x51f   :  { %v1482_v32 = vpack.c.bf16 %v1474_v6, %v1473_v44 }
 0x521   :  { %1591 = vmatmul.bf16.gmra.mxu2 %v1482_v32 }
 0x534   :  { %v1557_v25 = vpop.f32.mrf.mxu2 }
 0x535   :  { %v1597_v6 = vmul.f32 %v1557_v25, %v3239_v35  ;;  %v2394_v25 = vld [vmem:[%s3688_s9 + $0x30] sm:$0xff] }
 0x53c   :  { %v1559_v33 = vpop.f32.mrf.mxu2 }
 0x53d   :  { %v1598_v37 = vmul.f32 %v1559_v33, %v3235_v50  ;;  %v2395_v33 = vld [vmem:[%s3688_s9 + $0x38] sm:$0xff] }
 0x53e   :  { %1799 = vmatpush.bf16.msra.mxu1 %v2395_v33 }
 0x53f   :  { %v1613_v32 = vpack.c.bf16 %v1598_v37, %v1597_v6 }
 0x542   :  { %1800 = vmatpush.bf16.msra.mxu1 %v2394_v25 }
 0x544   :  { %v1562_v18 = vpop.f32.mrf.mxu2 }
 0x545   :  { %v1599_v52 = vmul.f32 %v1562_v18, %v3221_v61 }
 0x54c   :  { %v1564_v38 = vpop.f32.mrf.mxu2 }
 0x54d   :  { %v1600_v22 = vmul.f32 %v1564_v38, %v3208_v39 }
 0x54f   :  { %v1614_v44 = vpack.c.bf16 %v1600_v22, %v1599_v52 }
 0x554   :  { %v1567_v36 = vpop.f32.mrf.mxu2 }
 0x555   :  { %v3516_v34 = vmul.f32 %v1567_v36, %v3201_v21  ;;  %v3560_v36 = vld [vmem:[%s3687_s8 + $0x2] ss:$0 sm:$0xff] }
 0x55c   :  { %v1569_v40 = vpop.f32.mrf.mxu2 }
 0x55d   :  { %v3511_v49 = vmul.f32 %v1569_v40, %v3210_v45 }
 0x55f   :  { %v1615_v26 = vpack.c.bf16 %v3511_v49, %v3516_v34 }
 0x564   :  { %v1572_v13 = vpop.f32.mrf.mxu2 }
 0x565   :  { %v3508_v24 = vmul.f32 %v1572_v13, %v3180_v51 }
 0x56c   :  { %v1574_v41 = vpop.f32.mrf.mxu2 }
 0x56d   :  { %v3503_v27 = vmul.f32 %v1574_v41, %v3169_v1 }
 0x56f   :  { %v1616_v55 = vpack.c.bf16 %v3503_v27, %v3508_v24 }
 0x574   :  { %v1577_v4 = vpop.f32.mrf.mxu2 }
 0x575   :  { %v3500_v0 = vmul.f32 %v1577_v4, %v3155_v54 }
 0x57c   :  { %v1579_v43 = vpop.f32.mrf.mxu2 }
 0x57d   :  { %v3495_v48 = vmul.f32 %v1579_v43, %v3142_v42 }
 0x57f   :  { %v1617_v58 = vpack.c.bf16 %v3495_v48, %v3500_v0 }
 0x584   :  { %v1582_v9 = vpop.f32.mrf.mxu2 }
 0x585   :  { %v3492_v29 = vmul.f32 %v1582_v9, %v3098_v57 }
 0x58c   :  { %v1584_v20 = vpop.f32.mrf.mxu2 }
 0x58d   :  { %v3487_v10 = vmul.f32 %v1584_v20, %v3136_v5 }
 0x58f   :  { %v1618_v19 = vpack.c.bf16 %v3487_v10, %v3492_v29 }
 0x594   :  { %v1587_v14 = vpop.f32.mrf.mxu2 }
 0x595   :  { %v3484_v53 = vmul.f32 %v1587_v14, %v3074_v12 }
 0x59c   :  { %v1589_v11 = vpop.f32.mrf.mxu2 }
 0x59d   :  { %v3479_v31 = vmul.f32 %v1589_v11, %v3079_v47 }
 0x59f   :  { %v1619_v2 = vpack.c.bf16 %v3479_v31, %v3484_v53 }
 0x5a4   :  { %v1592_v63 = vpop.f32.mrf.mxu2 }
 0x5a5   :  { %v3473_v28 = vmul.f32 %v1592_v63, %v3062_v46 }
 0x5ac   :  { %v1594_v15 = vpop.f32.mrf.mxu2 }
 0x5ad   :  { %v3476_v7 = vmul.f32 %v1594_v15, %v3081_v3 }
 0x5af   :  { %v1620_v17 = vpack.c.bf16 %v3476_v7, %v3473_v28 }
 0x5b1   :  { %1621 = vmatpush.bf16.msra.mxu0 %v1620_v17 }
 0x5b5   :  { %1622 = vmatpush.bf16.msra.mxu0 %v1619_v2 }
 0x5b9   :  { %1623 = vmatpush.bf16.msra.mxu0 %v1618_v19 }
 0x5bd   :  { %1624 = vmatpush.bf16.msra.mxu0 %v1617_v58 }
 0x5c1   :  { %1625 = vmatpush.bf16.msra.mxu0 %v1616_v55 }
 0x5c5   :  { %1626 = vmatpush.bf16.msra.mxu0 %v1615_v26 }
 0x5c9   :  { %1627 = vmatpush.bf16.msra.mxu0 %v1614_v44 }
 0x5cd   :  { %1628 = vmatpush.bf16.msra.mxu0 %v1613_v32 }
 0x5d0   :  { %1629 = vmatmul.bf16.vlgmr.msra.gmra.mxu0 %v3247_v30  ;;  %v2393_v30 = vld [vmem:[%s3688_s9 + $0x28] sm:$0xff] }
 0x5d1   :  { %1801 = vmatpush.bf16.msra.mxu1 %v2393_v30 }
 0x5e0   :  { %1634 = vmatmul.bf16.gmra.mxu0 %v3252_v8  ;;  %v2390_v8 = vld [vmem:[%s3688_s9 + $0x10] sm:$0xff] }
 0x5f0   :  { %1639 = vmatmul.bf16.gmra.mxu0 %v3257_v60  ;;  %v2389_v60 = vld [vmem:[%s3688_s9 + $0x8] sm:$0xff] }
 0x600   :  { %1644 = vmatmul.bf16.gmra.mxu0 %v3262_v23 }
 0x610   :  { %1649 = vmatmul.bf16.gmra.mxu0 %v2905_v62  ;;  %v2392_v62 = vld [vmem:[%s3688_s9 + $0x20] sm:$0xff] }
 0x611   :  { %1802 = vmatpush.bf16.msra.mxu1 %v2392_v62 }
 0x620   :  { %1654 = vmatmul.bf16.gmra.mxu0 %v2909_v56  ;;  %v2391_v56 = vld [vmem:[%s3688_s9 + $0x18] sm:$0xff] }
 0x621   :  { %1803 = vmatpush.bf16.msra.mxu1 %v2391_v56 }
 0x625   :  { %1804 = vmatpush.bf16.msra.mxu1 %v2390_v8 }
 0x629   :  { %1805 = vmatpush.bf16.msra.mxu1 %v2389_v60 }
 0x630   :  { %1659 = vmatmul.bf16.gmra.mxu0 %v2911_v16  ;;  %v2388_v16 = vld [vmem:[%s3688_s9] sm:$0xff] }
 0x631   :  { %1806 = vmatpush.bf16.msra.mxu1 %v2388_v16 }
 0x640   :  { %1664 = vmatmul.bf16.gmra.mxu0 %v3697_v59 }
 0x64d   :  { %v1630_v23 = vpop.f32.mrf.mxu0 }
 0x64e   :  { %v1631_v18 = vadd.f32 %v1630_v23, %v1597_v6 }
 0x650   :  { %v1670_v38 = vmul.f32 %v1631_v18, %v3239_v35 }
 0x652   :  { %v1691_v41 = vadd.f32 %v3560_v36, %v1670_v38 }
 0x654   :  { %v1707_v9 = vmax.f32 %v1691_v41, 0.0 }
 0x655   :  { %v1632_v40 = vpop.f32.mrf.mxu0 }
 0x656   :  { %v1633_v13 = vadd.f32 %v1632_v40, %v1598_v37 }
 0x658   :  { %v1671_v4 = vmul.f32 %v1633_v13, %v3235_v50 }
 0x65a   :  { %v1692_v43 = vadd.f32 %v3560_v36, %v1671_v4 }
 0x65c   :  { %v1708_v59 = vmax.f32 %v1692_v43, 0.0 }
 0x65d   :  { %v1635_v20 = vpop.f32.mrf.mxu0 }
 0x65e   :  { %v1723_v14 = vpack.c.bf16 %v1708_v59, %v1707_v9  ;;  %v1636_v11 = vadd.f32 %v1635_v20, %v1599_v52 }
 0x660   :  { %1807 = vmatmul.bf16.vlgmr.msra.gmra.mxu1 %v1723_v14  ;;  %v1672_v35 = vmul.f32 %v1636_v11, %v3221_v61 }
 0x662   :  { %v1693_v17 = vadd.f32 %v3560_v36, %v1672_v35 }
 0x664   :  { %v1709_v58 = vmax.f32 %v1693_v17, 0.0 }
 0x665   :  { %v1637_v63 = vpop.f32.mrf.mxu0 }
 0x666   :  { %v1638_v15 = vadd.f32 %v1637_v63, %v1600_v22  ;;  %v2399_v63 = vld [vmem:[%s3690_s11 + $0x18] sm:$0xff] }
 0x667   :  { %1937 = vmatpush.bf16.msra.mxu3 %v2399_v63 }
 0x668   :  { %v1673_v2 = vmul.f32 %v1638_v15, %v3208_v39 }
 0x66a   :  { %v1694_v19 = vadd.f32 %v3560_v36, %v1673_v2 }
 0x66c   :  { %v1710_v50 = vmax.f32 %v1694_v19, 0.0 }
 0x66d   :  { %v1640_v55 = vpop.f32.mrf.mxu0 }
 0x66e   :  { %v1724_v26 = vpack.c.bf16 %v1710_v50, %v1709_v58  ;;  %v1641_v37 = vadd.f32 %v1640_v55, %v3516_v34 }
 0x670   :  { %1812 = vmatmul.bf16.gmra.mxu1 %v1724_v26  ;;  %v1674_v52 = vmul.f32 %v1641_v37, %v3201_v21 }
 0x672   :  { %v1695_v22 = vadd.f32 %v3560_v36, %v1674_v52 }
 0x674   :  { %v1711_v32 = vmax.f32 %v1695_v22, 0.0 }
 0x675   :  { %v1642_v44 = vpop.f32.mrf.mxu0 }
 0x676   :  { %v1643_v61 = vadd.f32 %v1642_v44, %v3511_v49 }
 0x678   :  { %v1675_v6 = vmul.f32 %v1643_v61, %v3210_v45 }
 0x67a   :  { %v1696_v39 = vadd.f32 %v3560_v36, %v1675_v6  ;;  %v2396_v6 = vld [vmem:[%s3690_s11] sm:$0xff] }
 0x67c   :  { %v1712_v33 = vmax.f32 %v1696_v39, 0.0 }
 0x67d   :  { %v1645_v25 = vpop.f32.mrf.mxu0 }
 0x67e   :  { %v1725_v30 = vpack.c.bf16 %v1712_v33, %v1711_v32  ;;  %v1646_v62 = vadd.f32 %v1645_v25, %v3508_v24  ;;  %v2410_v33 = vld [vmem:[%s3689_s10] ss:$0 sm:$0xff] }
 0x680   :  { %1817 = vmatmul.bf16.gmra.mxu1 %v1725_v30  ;;  %v1676_v34 = vmul.f32 %v1646_v62, %v3180_v51 }
 0x682   :  { %v1697_v49 = vadd.f32 %v3560_v36, %v1676_v34 }
 0x684   :  { %v1713_v60 = vmax.f32 %v1697_v49, 0.0 }
 0x685   :  { %v1647_v56 = vpop.f32.mrf.mxu0 }
 0x686   :  { %v1648_v21 = vadd.f32 %v1647_v56, %v3503_v27 }
 0x688   :  { %v1677_v8 = vmul.f32 %v1648_v21, %v3169_v1 }
 0x68a   :  { %v1698_v45 = vadd.f32 %v3560_v36, %v1677_v8 }
 0x68c   :  { %v1714_v16 = vmax.f32 %v1698_v45, 0.0 }
 0x68d   :  { %v1650_v23 = vpop.f32.mrf.mxu0 }
 0x68e   :  { %v1726_v18 = vpack.c.bf16 %v1714_v16, %v1713_v60  ;;  %v1651_v38 = vadd.f32 %v1650_v23, %v3500_v0 }
 0x690   :  { %1822 = vmatmul.bf16.gmra.mxu1 %v1726_v18  ;;  %v1678_v24 = vmul.f32 %v1651_v38, %v3155_v54 }
 0x692   :  { %v1699_v27 = vadd.f32 %v3560_v36, %v1678_v24 }
 0x694   :  { %v1715_v41 = vmax.f32 %v1699_v27, 0.0 }
 0x695   :  { %v1652_v40 = vpop.f32.mrf.mxu0 }
 0x696   :  { %v1653_v51 = vadd.f32 %v1652_v40, %v3495_v48 }
 0x698   :  { %v1679_v13 = vmul.f32 %v1653_v51, %v3142_v42 }
 0x69a   :  { %v1700_v1 = vadd.f32 %v3560_v36, %v1679_v13 }
 0x69c   :  { %v1716_v4 = vmax.f32 %v1700_v1, 0.0 }
 0x69d   :  { %v1655_v43 = vpop.f32.mrf.mxu0 }
 0x69e   :  { %v1727_v9 = vpack.c.bf16 %v1716_v4, %v1715_v41  ;;  %v1656_v59 = vadd.f32 %v1655_v43, %v3492_v29 }
 0x6a0   :  { %1827 = vmatmul.bf16.gmra.mxu1 %v1727_v9  ;;  %v1680_v0 = vmul.f32 %v1656_v59, %v3098_v57 }
 0x6a2   :  { %v1701_v48 = vadd.f32 %v3560_v36, %v1680_v0 }
 0x6a4   :  { %v1717_v11 = vmax.f32 %v1701_v48, 0.0 }
 0x6a5   :  { %v1657_v20 = vpop.f32.mrf.mxu0 }
 0x6a6   :  { %v1658_v54 = vadd.f32 %v1657_v20, %v3487_v10 }
 0x6a8   :  { %v1681_v14 = vmul.f32 %v1658_v54, %v3136_v5 }
 0x6aa   :  { %v1702_v42 = vadd.f32 %v3560_v36, %v1681_v14 }
 0x6ac   :  { %v1718_v35 = vmax.f32 %v1702_v42, 0.0 }
 0x6ad   :  { %v1660_v15 = vpop.f32.mrf.mxu0 }
 0x6ae   :  { %v1728_v29 = vpack.c.bf16 %v1718_v35, %v1717_v11  ;;  %v1661_v57 = vadd.f32 %v1660_v15, %v3484_v53 }
 0x6b0   :  { %1832 = vmatmul.bf16.gmra.mxu1 %v1728_v29  ;;  %v1682_v10 = vmul.f32 %v1661_v57, %v3074_v12  ;;  %v2398_v12 = vld [vmem:[%s3690_s11 + $0x10] sm:$0xff] }
 0x6b1   :  { %1938 = vmatpush.bf16.msra.mxu3 %v2398_v12 }
 0x6b2   :  { %v1703_v5 = vadd.f32 %v3560_v36, %v1682_v10 }
 0x6b4   :  { %v1719_v50 = vmax.f32 %v1703_v5, 0.0 }
 0x6b5   :  { %v1662_v17 = vpop.f32.mrf.mxu0 }
 0x6b6   :  { %v1663_v2 = vadd.f32 %v1662_v17, %v3479_v31 }
 0x6b8   :  { %v1683_v19 = vmul.f32 %v1663_v2, %v3079_v47  ;;  %v2397_v47 = vld [vmem:[%s3690_s11 + $0x8] sm:$0xff] }
 0x6b9   :  { %1939 = vmatpush.bf16.msra.mxu3 %v2397_v47 }
 0x6ba   :  { %v1704_v58 = vadd.f32 %v3560_v36, %v1683_v19 }
 0x6bc   :  { %v1720_v55 = vmax.f32 %v1704_v58, 0.0 }
 0x6bd   :  { %v1665_v26 = vpop.f32.mrf.mxu0  ;;  %1940 = vmatpush.bf16.msra.mxu3 %v2396_v6 }
 0x6be   :  { %v1729_v37 = vpack.c.bf16 %v1720_v55, %v1719_v50  ;;  %v1666_v52 = vadd.f32 %v1665_v26, %v3473_v28 }
 0x6c0   :  { %1837 = vmatmul.bf16.gmra.mxu1 %v1729_v37  ;;  %v1684_v31 = vmul.f32 %v1666_v52, %v3062_v46 }
 0x6c2   :  { %v1705_v61 = vadd.f32 %v3560_v36, %v1684_v31 }
 0x6c4   :  { %v1721_v39 = vmax.f32 %v1705_v61, 0.0  ;;  %v2411_v61 = vld [vmem:[%s3691_s12] ss:$0 sm:$0xff] }
 0x6c5   :  { %v1667_v53 = vpop.f32.mrf.mxu0 }
 0x6c6   :  { %v1668_v44 = vadd.f32 %v1667_v53, %v3476_v7 }
 0x6c8   :  { %v1685_v22 = vmul.f32 %v1668_v44, %v3081_v3 }
 0x6ca   :  { %v1706_v28 = vadd.f32 %v3560_v36, %v1685_v22 }
 0x6cc   :  { %v1722_v46 = vmax.f32 %v1706_v28, 0.0 }
 0x6ce   :  { %v1730_v32 = vpack.c.bf16 %v1722_v46, %v1721_v39 }
 0x6d0   :  { %1842 = vmatmul.bf16.gmra.mxu1 %v1730_v32 }
 0x6dd   :  { %v1808_v7 = vpop.f32.mrf.mxu1 }
 0x6de   :  { %v1809_v25 = vadd.f32 %v2410_v33, %v1808_v7 }
 0x6e0   :  { %v1848_v62 = vmax.f32 %v1809_v25, 0.0 }
 0x6e5   :  { %v1810_v30 = vpop.f32.mrf.mxu1 }
 0x6e6   :  { %v1811_v3 = vadd.f32 %v2410_v33, %v1810_v30 }
 0x6e8   :  { %v1849_v34 = vmax.f32 %v1811_v3, 0.0 }
 0x6ea   :  { %v1864_v36 = vpack.c.bf16 %v1849_v34, %v1848_v62 }
 0x6ec   :  { %2348 = vmatmul.msk.bf16.vlgmr.msra.gmra.mxu3 %vm1908_vm2, %v1864_v36 }
 0x6ed   :  { %v1813_v56 = vpop.f32.mrf.mxu1 }
 0x6ee   :  { %v1814_v21 = vadd.f32 %v2410_v33, %v1813_v56 }
 0x6f0   :  { %v1850_v45 = vmax.f32 %v1814_v21, 0.0 }
 0x6f5   :  { %v1815_v49 = vpop.f32.mrf.mxu1 }
 0x6f6   :  { %v1816_v8 = vadd.f32 %v2410_v33, %v1815_v49 }
 0x6f8   :  { %v1851_v60 = vmax.f32 %v1816_v8, 0.0 }
 0x6fa   :  { %v1865_v16 = vpack.c.bf16 %v1851_v60, %v1850_v45 }
 0x6fc   :  { %2349 = vmatmul.msk.bf16.gmra.mxu3 %vm1908_vm2, %v1865_v16 }
 0x6fd   :  { %v1818_v23 = vpop.f32.mrf.mxu1 }
 0x6fe   :  { %v1819_v18 = vadd.f32 %v2410_v33, %v1818_v23 }
 0x700   :  { %v1852_v40 = vmax.f32 %v1819_v18, 0.0 }
 0x705   :  { %v1820_v38 = vpop.f32.mrf.mxu1 }
 0x706   :  { %v1821_v24 = vadd.f32 %v2410_v33, %v1820_v38 }
 0x708   :  { %v1853_v51 = vmax.f32 %v1821_v24, 0.0 }
 0x70a   :  { %v1866_v27 = vpack.c.bf16 %v1853_v51, %v1852_v40 }
 0x70c   :  { %2350 = vmatmul.msk.bf16.gmra.mxu3 %vm1908_vm2, %v1866_v27 }
 0x70d   :  { %v1823_v13 = vpop.f32.mrf.mxu1 }
 0x70e   :  { %v1824_v1 = vadd.f32 %v2410_v33, %v1823_v13 }
 0x710   :  { %v1854_v43 = vmax.f32 %v1824_v1, 0.0 }
 0x715   :  { %v1825_v41 = vpop.f32.mrf.mxu1 }
 0x716   :  { %v1826_v4 = vadd.f32 %v2410_v33, %v1825_v41 }
 0x718   :  { %v1855_v9 = vmax.f32 %v1826_v4, 0.0 }
 0x71a   :  { %v1867_v59 = vpack.c.bf16 %v1855_v9, %v1854_v43 }
 0x71c   :  { %2351 = vmatmul.msk.bf16.gmra.mxu3 %vm1908_vm2, %v1867_v59 }
 0x71d   :  { %v1828_v0 = vpop.f32.mrf.mxu1 }
 0x71e   :  { %v1829_v20 = vadd.f32 %v2410_v33, %v1828_v0 }
 0x720   :  { %v1856_v14 = vmax.f32 %v1829_v20, 0.0 }
 0x725   :  { %v1830_v54 = vpop.f32.mrf.mxu1 }
 0x726   :  { %v1831_v48 = vadd.f32 %v2410_v33, %v1830_v54 }
 0x728   :  { %v1857_v42 = vmax.f32 %v1831_v48, 0.0 }
 0x72a   :  { %v1868_v11 = vpack.c.bf16 %v1857_v42, %v1856_v14 }
 0x72c   :  { %2352 = vmatmul.msk.bf16.gmra.mxu3 %vm1908_vm2, %v1868_v11 }
 0x72d   :  { %v1833_v35 = vpop.f32.mrf.mxu1 }
 0x72e   :  { %v1834_v63 = vadd.f32 %v2410_v33, %v1833_v35 }
 0x730   :  { %v1858_v57 = vmax.f32 %v1834_v63, 0.0 }
 0x735   :  { %v1835_v15 = vpop.f32.mrf.mxu1 }
 0x736   :  { %v1836_v29 = vadd.f32 %v2410_v33, %v1835_v15 }
 0x738   :  { %v1859_v10 = vmax.f32 %v1836_v29, 0.0 }
 0x73a   :  { %v1869_v17 = vpack.c.bf16 %v1859_v10, %v1858_v57 }
 0x73c   :  { %2353 = vmatmul.msk.bf16.gmra.mxu3 %vm1908_vm2, %v1869_v17 }
 0x73d   :  { %v1838_v2 = vpop.f32.mrf.mxu1 }
 0x73e   :  { %v1839_v5 = vadd.f32 %v2410_v33, %v1838_v2 }
 0x740   :  { %v1860_v50 = vmax.f32 %v1839_v5, 0.0 }
 0x745   :  { %v1840_v19 = vpop.f32.mrf.mxu1 }
 0x746   :  { %v1841_v58 = vadd.f32 %v2410_v33, %v1840_v19 }
 0x748   :  { %v1861_v55 = vmax.f32 %v1841_v58, 0.0 }
 0x74a   :  { %v1870_v26 = vpack.c.bf16 %v1861_v55, %v1860_v50 }
 0x74c   :  { %2354 = vmatmul.msk.bf16.gmra.mxu3 %vm1908_vm2, %v1870_v26 }
 0x74d   :  { %v1843_v37 = vpop.f32.mrf.mxu1 }
 0x74e   :  { %v1844_v52 = vadd.f32 %v2410_v33, %v1843_v37 }
 0x750   :  { %v1862_v53 = vmax.f32 %v1844_v52, 0.0 }
 0x755   :  { %v1845_v12 = vpop.f32.mrf.mxu1 }
 0x756   :  { %v1846_v31 = vadd.f32 %v2410_v33, %v1845_v12 }
 0x758   :  { %v1863_v44 = vmax.f32 %v1846_v31, 0.0 }
 0x75a   :  { %v1871_v47 = vpack.c.bf16 %v1863_v44, %v1862_v53 }
 0x75c   :  { %2355 = vmatmul.msk.bf16.gmra.mxu3 %vm1908_vm2, %v1871_v47 }
 0x76f   :  { %v1942_v22 = vpop.f32.mrf.mxu3 }
 0x770   :  { %v1943_v28 = vadd.f32 %v2411_v61, %v1942_v22 }
 0x772   :  { %1982 = vst [vmem:[%s3692_s13] sm:$0xff] %v1943_v28 }
 0x777   :  { %v1944_v6 = vpop.f32.mrf.mxu3 }
 0x778   :  { %v1945_v39 = vadd.f32 %v2411_v61, %v1944_v6 }
 0x77a   :  { %1983 = vst [vmem:[%s3692_s13 + $0x8] sm:$0xff] %v1945_v39 }
 0x77f   :  { %v1947_v46 = vpop.f32.mrf.mxu3 }
 0x780   :  { %v1948_v32 = vadd.f32 %v2411_v61, %v1947_v46 }
 0x782   :  { %1984 = vst [vmem:[%s3692_s13 + $0x10] sm:$0xff] %v1948_v32 }
 0x787   :  { %v1949_v7 = vpop.f32.mrf.mxu3 }
 0x788   :  { %v1950_v33 = vadd.f32 %v2411_v61, %v1949_v7 }
 0x78a   :  { %1985 = vst [vmem:[%s3692_s13 + $0x18] sm:$0xff] %v1950_v33 }
 0x78f   :  { %v1952_v25 = vpop.f32.mrf.mxu3 }
 0x790   :  { %v1953_v30 = vadd.f32 %v2411_v61, %v1952_v25 }
 0x792   :  { %1986 = vst [vmem:[%s3692_s13 + $0x20] sm:$0xff] %v1953_v30 }
 0x797   :  { %v1954_v3 = vpop.f32.mrf.mxu3 }
 0x798   :  { %v1955_v62 = vadd.f32 %v2411_v61, %v1954_v3 }
 0x79a   :  { %1987 = vst [vmem:[%s3692_s13 + $0x28] sm:$0xff] %v1955_v62 }
 0x79f   :  { %v1957_v34 = vpop.f32.mrf.mxu3 }
 0x7a0   :  { %v1958_v36 = vadd.f32 %v2411_v61, %v1957_v34 }
 0x7a2   :  { %1988 = vst [vmem:[%s3692_s13 + $0x30] sm:$0xff] %v1958_v36 }
 0x7a7   :  { %v1959_v56 = vpop.f32.mrf.mxu3 }
 0x7a8   :  { %v1960_v21 = vadd.f32 %v2411_v61, %v1959_v56 }
 0x7aa   :  { %1989 = vst [vmem:[%s3692_s13 + $0x38] sm:$0xff] %v1960_v21 }
 0x7af   :  { %v1962_v49 = vpop.f32.mrf.mxu3 }
 0x7b0   :  { %v1963_v8 = vadd.f32 %v2411_v61, %v1962_v49 }
 0x7b2   :  { %1990 = vst [vmem:[%s3692_s13 + $0x40] sm:$0xff] %v1963_v8 }
 0x7b7   :  { %v1964_v45 = vpop.f32.mrf.mxu3 }
 0x7b8   :  { %v1965_v60 = vadd.f32 %v2411_v61, %v1964_v45 }
 0x7ba   :  { %1991 = vst [vmem:[%s3692_s13 + $0x48] sm:$0xff] %v1965_v60 }
 0x7bf   :  { %v1967_v16 = vpop.f32.mrf.mxu3 }
 0x7c0   :  { %v1968_v23 = vadd.f32 %v2411_v61, %v1967_v16 }
 0x7c2   :  { %1992 = vst [vmem:[%s3692_s13 + $0x50] sm:$0xff] %v1968_v23 }
 0x7c7   :  { %v1969_v18 = vpop.f32.mrf.mxu3 }
 0x7c8   :  { %v1970_v38 = vadd.f32 %v2411_v61, %v1969_v18 }
 0x7ca   :  { %1993 = vst [vmem:[%s3692_s13 + $0x58] sm:$0xff] %v1970_v38 }
 0x7cf   :  { %v1972_v24 = vpop.f32.mrf.mxu3 }
 0x7d0   :  { %v1973_v40 = vadd.f32 %v2411_v61, %v1972_v24 }
 0x7d2   :  { %1994 = vst [vmem:[%s3692_s13 + $0x60] sm:$0xff] %v1973_v40 }
 0x7d7   :  { %v1974_v51 = vpop.f32.mrf.mxu3 }
 0x7d8   :  { %v1975_v27 = vadd.f32 %v2411_v61, %v1974_v51 }
 0x7da   :  { %1995 = vst [vmem:[%s3692_s13 + $0x68] sm:$0xff] %v1975_v27 }
 0x7df   :  { %v1977_v13 = vpop.f32.mrf.mxu3 }
 0x7e0   :  { %v1978_v1 = vadd.f32 %v2411_v61, %v1977_v13 }
 0x7e2   :  { %1996 = vst [vmem:[%s3692_s13 + $0x70] sm:$0xff] %v1978_v1 }
 0x7e7   :  { %v1979_v41 = vpop.f32.mrf.mxu3 }
 0x7e8   :  { %v1980_v4 = vadd.f32 %v2411_v61, %v1979_v41 }
 0x7ea   :  { %1997 = vst [vmem:[%s3692_s13 + $0x78] sm:$0xff] %v1980_v4 }

</bundles_post_ra>
